<compile_context>
chip_gen: v6e
topology: v6e:2x2x1
jax: 0.10.0
libtpu: 0.0.40
codegen_flags: <defaults>
</compile_context>

<pallas_src>
import jax
import jax.numpy as jnp
from jax import lax
from jax.experimental import pallas as pl
from jax.experimental.pallas import tpu as pltpu


def residual_kernel(xpad_ref, w1_ref, w2_ref, o_ref, acc_ref):
    # xpad_ref: (1, H+2, W+2, Cp)  zero-padded (spatial halo + channel pad) input, NOT ReLU'd
    # w1_ref  : (9, Cp, Cp)        3x3 conv taps (bf16), tap index = kh*3 + kw
    # w2_ref  : (Cp, Cp)           1x1 conv (bf16)
    # o_ref   : (1, H, W, Cp)
    # acc_ref : (H*W, Cp) f32 VMEM scratch accumulator
    H = o_ref.shape[1]
    W = o_ref.shape[2]
    C = o_ref.shape[3]

    # ReLU before conv_1 (relu(pad0(x)) == pad0(relu(x))); cast once to bf16 for the MXU.
    xp = jnp.maximum(xpad_ref[0], 0.0).astype(jnp.bfloat16)      # (H+2, W+2, Cp)

    # 3x3 conv, stride 1, padding 1 -> 9 shifted-window matmuls accumulated in f32.
    acc_ref[...] = jnp.zeros_like(acc_ref)
    for kh in range(3):
        for kw in range(3):
            patch = xp[kh:kh + H, kw:kw + W, :].reshape(H * W, C)
            acc_ref[...] += jnp.dot(patch, w1_ref[kh * 3 + kw],
                                    preferred_element_type=jnp.float32)

    # TODO(synk): use_bn=True path (nn.BatchNorm2d) not implemented; module default is use_bn=False.

    # ReLU before conv_2, then 1x1 conv == plain matmul over channels (f32 elementwise, bf16 MXU in).
    h = jnp.maximum(acc_ref[...], 0.0).astype(jnp.bfloat16)      # (H*W, Cp)
    y = jnp.dot(h, w2_ref[...], preferred_element_type=jnp.float32)

    # Residual add: centre of the (un-ReLU'd) padded block is exactly x (pad value is 0).
    x_center = xpad_ref[0, 1:H + 1, 1:W + 1, :]                  # (H, W, Cp) f32
    o_ref[0] = (x_center + y.reshape(H, W, C)).astype(o_ref.dtype)


def residual_forward(x_nchw, w1_oihw, w2_oihw, *, lane=128):
    """x_nchw: (B, C, H, W) f32; w1_oihw: (Cout, Cin, 3, 3); w2_oihw: (Cout, Cout, 1, 1)."""
    B, C, H, W = x_nchw.shape
    Cout = w1_oihw.shape[0]
    assert Cout == C, "Residual add requires in_channels == out_channels"
    Cp = ((max(C, Cout) + lane - 1) // lane) * lane              # lane-dense channel count

    # Glue: NCHW -> NHWC; one pad that adds the 3x3 spatial halo AND the channel padding.
    x_nhwc = jnp.transpose(x_nchw, (0, 2, 3, 1))                               # (B, H, W, C)
    x_pad = jnp.pad(x_nhwc, ((0, 0), (1, 1), (1, 1), (0, Cp - C)))             # (B, H+2, W+2, Cp)

    # Weights: (Cout, Cin, kh, kw) -> (9, Cin, Cout), zero-padded to (9, Cp, Cp), bf16 for MXU.
    w1 = jnp.transpose(w1_oihw, (2, 3, 1, 0)).reshape(9, C, Cout)
    w1 = jnp.pad(w1, ((0, 0), (0, Cp - C), (0, Cp - Cout))).astype(jnp.bfloat16)
    w2 = jnp.transpose(w2_oihw[:, :, 0, 0], (1, 0))
    w2 = jnp.pad(w2, ((0, Cp - Cout), (0, Cp - Cout))).astype(jnp.bfloat16)

    out_nhwc = pl.pallas_call(
        residual_kernel,
        out_shape=jax.ShapeDtypeStruct((B, H, W, Cp), x_nchw.dtype),
        grid_spec=pltpu.PrefetchScalarGridSpec(
            num_scalar_prefetch=0,
            grid=(B,),
            in_specs=[
                pl.BlockSpec((1, H + 2, W + 2, Cp), lambda b: (b, 0, 0, 0)),
                pl.BlockSpec((9, Cp, Cp), lambda b: (0, 0, 0)),
                pl.BlockSpec((Cp, Cp), lambda b: (0, 0)),
            ],
            out_specs=pl.BlockSpec((1, H, W, Cp), lambda b: (b, 0, 0, 0)),
            scratch_shapes=[pltpu.VMEM((H * W, Cp), jnp.float32)],
        ),
        compiler_params=pltpu.CompilerParams(dimension_semantics=("parallel",)),
    )(x_pad, w1, w2)

    # Drop channel padding, back to NCHW.
    return jnp.transpose(out_nhwc[:, :, :, :Cout], (0, 3, 1, 2))


def residual_reference(x_nchw, w1_oihw, w2_oihw):
    """Pure-JAX f32 reference matching the PyTorch forward (NCHW)."""
    h = jnp.maximum(x_nchw, 0.0)
    h = lax.conv_general_dilated(
        h, w1_oihw, window_strides=(1, 1), padding=((1, 1), (1, 1)),
        dimension_numbers=("NCHW", "OIHW", "NCHW"))
    h = jnp.maximum(h, 0.0)
    h = lax.conv_general_dilated(
        h, w2_oihw, window_strides=(1, 1), padding=((0, 0), (0, 0)),
        dimension_numbers=("NCHW", "OIHW", "NCHW"))
    return x_nchw + h


if __name__ == "__main__":
    key = jax.random.PRNGKey(0)
    kx, k1, k2 = jax.random.split(key, 3)

    B, C, H, W = 2, 4, 16, 16          # in_channels == out_channels (required for x + x_new)
    Cout = C

    x = jax.random.normal(kx, (B, C, H, W), dtype=jnp.float32)
    w1 = jax.random.normal(k1, (Cout, C, 3, 3), dtype=jnp.float32) * 0.1     # Conv2d 3x3, bias=False
    w2 = jax.random.normal(k2, (Cout, Cout, 1, 1), dtype=jnp.float32) * 0.1  # Conv2d 1x1, bias=False

    out = residual_forward(x, w1, w2)
    out = jax.block_until_ready(out)

    ref = residual_reference(x, w1, w2)
    assert out.shape == (B, Cout, H, W)
    # Tolerance sized for bf16 MXU inputs (f32 accumulation); f32 reference.
    assert jnp.allclose(out, ref, atol=3e-2, rtol=3e-2)

    print("KERNEL_OK")
</pallas_src>

<mosaic_0001>
module attributes {stable_mosaic.version = 11 : i64} {
  func.func @residual_kernel(%arg0: i32, %arg1: memref<1x18x18x128xf32, #tpu.memory_space<vmem>>, %arg2: memref<9x128x128xbf16, #tpu.memory_space<vmem>>, %arg3: memref<128x128xbf16, #tpu.memory_space<vmem>>, %arg4: memref<1x16x16x128xf32, #tpu.memory_space<vmem>>, %arg5: memref<256x128xf32, #tpu.memory_space<vmem>>) attributes {dimension_semantics = [#tpu.dimension_semantics<parallel>], iteration_bounds = array<i64: 2>, scalar_prefetch = 0 : i64, scratch_operands = 1 : i64, tpu.core_type = #tpu.core_type<tc>, window_params = [{transform_indices = @transform_0, window_bounds = array<i64: 1, 18, 18, 128>}, {pipeline_mode = #tpu.pipeline_mode<synchronous>, transform_indices = @transform_1, window_bounds = array<i64: 9, 128, 128>}, {pipeline_mode = #tpu.pipeline_mode<synchronous>, transform_indices = @transform_2, window_bounds = array<i64: 128, 128>}, {transform_indices = @transform_3, window_bounds = array<i64: 1, 16, 16, 128>}]} {
    %c0 = arith.constant 0 : index
    %c0_0 = arith.constant 0 : index
    %c0_1 = arith.constant 0 : index
    %c0_2 = arith.constant 0 : index
    %0 = vector.load %arg1[%c0, %c0_0, %c0_1, %c0_2] : memref<1x18x18x128xf32, #tpu.memory_space<vmem>>, vector<1x18x18x128xf32>
    %1 = vector.shape_cast %0 : vector<1x18x18x128xf32> to vector<18x18x128xf32>
    %cst = arith.constant 0.000000e+00 : f32
    %2 = vector.broadcast %cst : f32 to vector<18x18x128xf32>
    %3 = arith.maximumf %1, %2 : vector<18x18x128xf32>
    %4 = arith.truncf %3 : vector<18x18x128xf32> to vector<18x18x128xbf16>
    %cst_3 = arith.constant 0.000000e+00 : f32
    %5 = vector.broadcast %cst_3 : f32 to vector<256x128xf32>
    %c0_4 = arith.constant 0 : index
    %c0_5 = arith.constant 0 : index
    %6 = vector.load %arg5[%c0_4, %c0_5] : memref<256x128xf32, #tpu.memory_space<vmem>>, vector<256x128xf32>
    tpu.vector_store %arg5[%c0_4, %c0_5], %5 {strides = array<i32>} : memref<256x128xf32, #tpu.memory_space<vmem>>, vector<256x128xf32>,
    %7 = vector.extract_strided_slice %4 {offsets = [0, 0, 0], sizes = [16, 16, 128], strides = [1, 1, 1]} : vector<18x18x128xbf16> to vector<16x16x128xbf16>
    %8 = vector.shape_cast %7 : vector<16x16x128xbf16> to vector<256x128xbf16>
    %c0_6 = arith.constant 0 : index
    %c0_7 = arith.constant 0 : index
    %9 = vector.load %arg5[%c0_6, %c0_7] : memref<256x128xf32, #tpu.memory_space<vmem>>, vector<256x128xf32>
    %c0_8 = arith.constant 0 : index
    %c0_9 = arith.constant 0 : index
    %c0_10 = arith.constant 0 : index
    %10 = vector.load %arg2[%c0_8, %c0_9, %c0_10] : memref<9x128x128xbf16, #tpu.memory_space<vmem>>, vector<1x128x128xbf16>
    %11 = vector.shape_cast %10 : vector<1x128x128xbf16> to vector<128x128xbf16>
    %cst_11 = arith.constant dense<0.000000e+00> : vector<256x128xf32>
    %12 = tpu.matmul %8, %11, %cst_11 {dimension_numbers = #tpu.dot_dimension_numbers<[1], [0], [0], [1], [0, 0, 1, 1], [], []>} : vector<256x128xbf16>, vector<128x128xbf16>, vector<256x128xf32> -> vector<256x128xf32>
    %13 = arith.addf %9, %12 : vector<256x128xf32>
    %c0_12 = arith.constant 0 : index
    %c0_13 = arith.constant 0 : index
    %14 = vector.load %arg5[%c0_12, %c0_13] : memref<256x128xf32, #tpu.memory_space<vmem>>, vector<256x128xf32>
    tpu.vector_store %arg5[%c0_12, %c0_13], %13 {strides = array<i32>} : memref<256x128xf32, #tpu.memory_space<vmem>>, vector<256x128xf32>,
    %15 = vector.extract_strided_slice %4 {offsets = [0, 1, 0], sizes = [16, 16, 128], strides = [1, 1, 1]} : vector<18x18x128xbf16> to vector<16x16x128xbf16>
    %16 = vector.shape_cast %15 : vector<16x16x128xbf16> to vector<256x128xbf16>
    %c0_14 = arith.constant 0 : index
    %c0_15 = arith.constant 0 : index
    %17 = vector.load %arg5[%c0_14, %c0_15] : memref<256x128xf32, #tpu.memory_space<vmem>>, vector<256x128xf32>
    %c1 = arith.constant 1 : index
    %c0_16 = arith.constant 0 : index
    %c0_17 = arith.constant 0 : index
    %18 = vector.load %arg2[%c1, %c0_16, %c0_17] : memref<9x128x128xbf16, #tpu.memory_space<vmem>>, vector<1x128x128xbf16>
    %19 = vector.shape_cast %18 : vector<1x128x128xbf16> to vector<128x128xbf16>
    %cst_18 = arith.constant dense<0.000000e+00> : vector<256x128xf32>
    %20 = tpu.matmul %16, %19, %cst_18 {dimension_numbers = #tpu.dot_dimension_numbers<[1], [0], [0], [1], [0, 0, 1, 1], [], []>} : vector<256x128xbf16>, vector<128x128xbf16>, vector<256x128xf32> -> vector<256x128xf32>
    %21 = arith.addf %17, %20 : vector<256x128xf32>
    %c0_19 = arith.constant 0 : index
    %c0_20 = arith.constant 0 : index
    %22 = vector.load %arg5[%c0_19, %c0_20] : memref<256x128xf32, #tpu.memory_space<vmem>>, vector<256x128xf32>
    tpu.vector_store %arg5[%c0_19, %c0_20], %21 {strides = array<i32>} : memref<256x128xf32, #tpu.memory_space<vmem>>, vector<256x128xf32>,
    %23 = vector.extract_strided_slice %4 {offsets = [0, 2, 0], sizes = [16, 16, 128], strides = [1, 1, 1]} : vector<18x18x128xbf16> to vector<16x16x128xbf16>
    %24 = vector.shape_cast %23 : vector<16x16x128xbf16> to vector<256x128xbf16>
    %c0_21 = arith.constant 0 : index
    %c0_22 = arith.constant 0 : index
    %25 = vector.load %arg5[%c0_21, %c0_22] : memref<256x128xf32, #tpu.memory_space<vmem>>, vector<256x128xf32>
    %c2 = arith.constant 2 : index
    %c0_23 = arith.constant 0 : index
    %c0_24 = arith.constant 0 : index
    %26 = vector.load %arg2[%c2, %c0_23, %c0_24] : memref<9x128x128xbf16, #tpu.memory_space<vmem>>, vector<1x128x128xbf16>
    %27 = vector.shape_cast %26 : vector<1x128x128xbf16> to vector<128x128xbf16>
    %cst_25 = arith.constant dense<0.000000e+00> : vector<256x128xf32>
    %28 = tpu.matmul %24, %27, %cst_25 {dimension_numbers = #tpu.dot_dimension_numbers<[1], [0], [0], [1], [0, 0, 1, 1], [], []>} : vector<256x128xbf16>, vector<128x128xbf16>, vector<256x128xf32> -> vector<256x128xf32>
    %29 = arith.addf %25, %28 : vector<256x128xf32>
    %c0_26 = arith.constant 0 : index
    %c0_27 = arith.constant 0 : index
    %30 = vector.load %arg5[%c0_26, %c0_27] : memref<256x128xf32, #tpu.memory_space<vmem>>, vector<256x128xf32>
    tpu.vector_store %arg5[%c0_26, %c0_27], %29 {strides = array<i32>} : memref<256x128xf32, #tpu.memory_space<vmem>>, vector<256x128xf32>,
    %31 = vector.extract_strided_slice %4 {offsets = [1, 0, 0], sizes = [16, 16, 128], strides = [1, 1, 1]} : vector<18x18x128xbf16> to vector<16x16x128xbf16>
    %32 = vector.shape_cast %31 : vector<16x16x128xbf16> to vector<256x128xbf16>
    %c0_28 = arith.constant 0 : index
    %c0_29 = arith.constant 0 : index
    %33 = vector.load %arg5[%c0_28, %c0_29] : memref<256x128xf32, #tpu.memory_space<vmem>>, vector<256x128xf32>
    %c3 = arith.constant 3 : index
    %c0_30 = arith.constant 0 : index
    %c0_31 = arith.constant 0 : index
    %34 = vector.load %arg2[%c3, %c0_30, %c0_31] : memref<9x128x128xbf16, #tpu.memory_space<vmem>>, vector<1x128x128xbf16>
    %35 = vector.shape_cast %34 : vector<1x128x128xbf16> to vector<128x128xbf16>
    %cst_32 = arith.constant dense<0.000000e+00> : vector<256x128xf32>
    %36 = tpu.matmul %32, %35, %cst_32 {dimension_numbers = #tpu.dot_dimension_numbers<[1], [0], [0], [1], [0, 0, 1, 1], [], []>} : vector<256x128xbf16>, vector<128x128xbf16>, vector<256x128xf32> -> vector<256x128xf32>
    %37 = arith.addf %33, %36 : vector<256x128xf32>
    %c0_33 = arith.constant 0 : index
    %c0_34 = arith.constant 0 : index
    %38 = vector.load %arg5[%c0_33, %c0_34] : memref<256x128xf32, #tpu.memory_space<vmem>>, vector<256x128xf32>
    tpu.vector_store %arg5[%c0_33, %c0_34], %37 {strides = array<i32>} : memref<256x128xf32, #tpu.memory_space<vmem>>, vector<256x128xf32>,
    %39 = vector.extract_strided_slice %4 {offsets = [1, 1, 0], sizes = [16, 16, 128], strides = [1, 1, 1]} : vector<18x18x128xbf16> to vector<16x16x128xbf16>
    %40 = vector.shape_cast %39 : vector<16x16x128xbf16> to vector<256x128xbf16>
    %c0_35 = arith.constant 0 : index
    %c0_36 = arith.constant 0 : index
    %41 = vector.load %arg5[%c0_35, %c0_36] : memref<256x128xf32, #tpu.memory_space<vmem>>, vector<256x128xf32>
    %c4 = arith.constant 4 : index
    %c0_37 = arith.constant 0 : index
    %c0_38 = arith.constant 0 : index
    %42 = vector.load %arg2[%c4, %c0_37, %c0_38] : memref<9x128x128xbf16, #tpu.memory_space<vmem>>, vector<1x128x128xbf16>
    %43 = vector.shape_cast %42 : vector<1x128x128xbf16> to vector<128x128xbf16>
    %cst_39 = arith.constant dense<0.000000e+00> : vector<256x128xf32>
    %44 = tpu.matmul %40, %43, %cst_39 {dimension_numbers = #tpu.dot_dimension_numbers<[1], [0], [0], [1], [0, 0, 1, 1], [], []>} : vector<256x128xbf16>, vector<128x128xbf16>, vector<256x128xf32> -> vector<256x128xf32>
    %45 = arith.addf %41, %44 : vector<256x128xf32>
    %c0_40 = arith.constant 0 : index
    %c0_41 = arith.constant 0 : index
    %46 = vector.load %arg5[%c0_40, %c0_41] : memref<256x128xf32, #tpu.memory_space<vmem>>, vector<256x128xf32>
    tpu.vector_store %arg5[%c0_40, %c0_41], %45 {strides = array<i32>} : memref<256x128xf32, #tpu.memory_space<vmem>>, vector<256x128xf32>,
    %47 = vector.extract_strided_slice %4 {offsets = [1, 2, 0], sizes = [16, 16, 128], strides = [1, 1, 1]} : vector<18x18x128xbf16> to vector<16x16x128xbf16>
    %48 = vector.shape_cast %47 : vector<16x16x128xbf16> to vector<256x128xbf16>
    %c0_42 = arith.constant 0 : index
    %c0_43 = arith.constant 0 : index
    %49 = vector.load %arg5[%c0_42, %c0_43] : memref<256x128xf32, #tpu.memory_space<vmem>>, vector<256x128xf32>
    %c5 = arith.constant 5 : index
    %c0_44 = arith.constant 0 : index
    %c0_45 = arith.constant 0 : index
    %50 = vector.load %arg2[%c5, %c0_44, %c0_45] : memref<9x128x128xbf16, #tpu.memory_space<vmem>>, vector<1x128x128xbf16>
    %51 = vector.shape_cast %50 : vector<1x128x128xbf16> to vector<128x128xbf16>
    %cst_46 = arith.constant dense<0.000000e+00> : vector<256x128xf32>
    %52 = tpu.matmul %48, %51, %cst_46 {dimension_numbers = #tpu.dot_dimension_numbers<[1], [0], [0], [1], [0, 0, 1, 1], [], []>} : vector<256x128xbf16>, vector<128x128xbf16>, vector<256x128xf32> -> vector<256x128xf32>
    %53 = arith.addf %49, %52 : vector<256x128xf32>
    %c0_47 = arith.constant 0 : index
    %c0_48 = arith.constant 0 : index
    %54 = vector.load %arg5[%c0_47, %c0_48] : memref<256x128xf32, #tpu.memory_space<vmem>>, vector<256x128xf32>
    tpu.vector_store %arg5[%c0_47, %c0_48], %53 {strides = array<i32>} : memref<256x128xf32, #tpu.memory_space<vmem>>, vector<256x128xf32>,
    %55 = vector.extract_strided_slice %4 {offsets = [2, 0, 0], sizes = [16, 16, 128], strides = [1, 1, 1]} : vector<18x18x128xbf16> to vector<16x16x128xbf16>
    %56 = vector.shape_cast %55 : vector<16x16x128xbf16> to vector<256x128xbf16>
    %c0_49 = arith.constant 0 : index
    %c0_50 = arith.constant 0 : index
    %57 = vector.load %arg5[%c0_49, %c0_50] : memref<256x128xf32, #tpu.memory_space<vmem>>, vector<256x128xf32>
    %c6 = arith.constant 6 : index
    %c0_51 = arith.constant 0 : index
    %c0_52 = arith.constant 0 : index
    %58 = vector.load %arg2[%c6, %c0_51, %c0_52] : memref<9x128x128xbf16, #tpu.memory_space<vmem>>, vector<1x128x128xbf16>
    %59 = vector.shape_cast %58 : vector<1x128x128xbf16> to vector<128x128xbf16>
    %cst_53 = arith.constant dense<0.000000e+00> : vector<256x128xf32>
    %60 = tpu.matmul %56, %59, %cst_53 {dimension_numbers = #tpu.dot_dimension_numbers<[1], [0], [0], [1], [0, 0, 1, 1], [], []>} : vector<256x128xbf16>, vector<128x128xbf16>, vector<256x128xf32> -> vector<256x128xf32>
    %61 = arith.addf %57, %60 : vector<256x128xf32>
    %c0_54 = arith.constant 0 : index
    %c0_55 = arith.constant 0 : index
    %62 = vector.load %arg5[%c0_54, %c0_55] : memref<256x128xf32, #tpu.memory_space<vmem>>, vector<256x128xf32>
    tpu.vector_store %arg5[%c0_54, %c0_55], %61 {strides = array<i32>} : memref<256x128xf32, #tpu.memory_space<vmem>>, vector<256x128xf32>,
    %63 = vector.extract_strided_slice %4 {offsets = [2, 1, 0], sizes = [16, 16, 128], strides = [1, 1, 1]} : vector<18x18x128xbf16> to vector<16x16x128xbf16>
    %64 = vector.shape_cast %63 : vector<16x16x128xbf16> to vector<256x128xbf16>
    %c0_56 = arith.constant 0 : index
    %c0_57 = arith.constant 0 : index
    %65 = vector.load %arg5[%c0_56, %c0_57] : memref<256x128xf32, #tpu.memory_space<vmem>>, vector<256x128xf32>
    %c7 = arith.constant 7 : index
    %c0_58 = arith.constant 0 : index
    %c0_59 = arith.constant 0 : index
    %66 = vector.load %arg2[%c7, %c0_58, %c0_59] : memref<9x128x128xbf16, #tpu.memory_space<vmem>>, vector<1x128x128xbf16>
    %67 = vector.shape_cast %66 : vector<1x128x128xbf16> to vector<128x128xbf16>
    %cst_60 = arith.constant dense<0.000000e+00> : vector<256x128xf32>
    %68 = tpu.matmul %64, %67, %cst_60 {dimension_numbers = #tpu.dot_dimension_numbers<[1], [0], [0], [1], [0, 0, 1, 1], [], []>} : vector<256x128xbf16>, vector<128x128xbf16>, vector<256x128xf32> -> vector<256x128xf32>
    %69 = arith.addf %65, %68 : vector<256x128xf32>
    %c0_61 = arith.constant 0 : index
    %c0_62 = arith.constant 0 : index
    %70 = vector.load %arg5[%c0_61, %c0_62] : memref<256x128xf32, #tpu.memory_space<vmem>>, vector<256x128xf32>
    tpu.vector_store %arg5[%c0_61, %c0_62], %69 {strides = array<i32>} : memref<256x128xf32, #tpu.memory_space<vmem>>, vector<256x128xf32>,
    %71 = vector.extract_strided_slice %4 {offsets = [2, 2, 0], sizes = [16, 16, 128], strides = [1, 1, 1]} : vector<18x18x128xbf16> to vector<16x16x128xbf16>
    %72 = vector.shape_cast %71 : vector<16x16x128xbf16> to vector<256x128xbf16>
    %c0_63 = arith.constant 0 : index
    %c0_64 = arith.constant 0 : index
    %73 = vector.load %arg5[%c0_63, %c0_64] : memref<256x128xf32, #tpu.memory_space<vmem>>, vector<256x128xf32>
    %c8 = arith.constant 8 : index
    %c0_65 = arith.constant 0 : index
    %c0_66 = arith.constant 0 : index
    %74 = vector.load %arg2[%c8, %c0_65, %c0_66] : memref<9x128x128xbf16, #tpu.memory_space<vmem>>, vector<1x128x128xbf16>
    %75 = vector.shape_cast %74 : vector<1x128x128xbf16> to vector<128x128xbf16>
    %cst_67 = arith.constant dense<0.000000e+00> : vector<256x128xf32>
    %76 = tpu.matmul %72, %75, %cst_67 {dimension_numbers = #tpu.dot_dimension_numbers<[1], [0], [0], [1], [0, 0, 1, 1], [], []>} : vector<256x128xbf16>, vector<128x128xbf16>, vector<256x128xf32> -> vector<256x128xf32>
    %77 = arith.addf %73, %76 : vector<256x128xf32>
    %c0_68 = arith.constant 0 : index
    %c0_69 = arith.constant 0 : index
    %78 = vector.load %arg5[%c0_68, %c0_69] : memref<256x128xf32, #tpu.memory_space<vmem>>, vector<256x128xf32>
    tpu.vector_store %arg5[%c0_68, %c0_69], %77 {strides = array<i32>} : memref<256x128xf32, #tpu.memory_space<vmem>>, vector<256x128xf32>,
    %c0_70 = arith.constant 0 : index
    %c0_71 = arith.constant 0 : index
    %79 = vector.load %arg5[%c0_70, %c0_71] : memref<256x128xf32, #tpu.memory_space<vmem>>, vector<256x128xf32>
    %cst_72 = arith.constant 0.000000e+00 : f32
    %80 = vector.broadcast %cst_72 : f32 to vector<256x128xf32>
    %81 = arith.maximumf %79, %80 : vector<256x128xf32>
    %82 = arith.truncf %81 : vector<256x128xf32> to vector<256x128xbf16>
    %c0_73 = arith.constant 0 : index
    %c0_74 = arith.constant 0 : index
    %83 = vector.load %arg3[%c0_73, %c0_74] : memref<128x128xbf16, #tpu.memory_space<vmem>>, vector<128x128xbf16>
    %cst_75 = arith.constant dense<0.000000e+00> : vector<256x128xf32>
    %84 = tpu.matmul %82, %83, %cst_75 {dimension_numbers = #tpu.dot_dimension_numbers<[1], [0], [0], [1], [0, 0, 1, 1], [], []>} : vector<256x128xbf16>, vector<128x128xbf16>, vector<256x128xf32> -> vector<256x128xf32>
    %c0_76 = arith.constant 0 : index
    %c1_77 = arith.constant 1 : index
    %c1_78 = arith.constant 1 : index
    %c0_79 = arith.constant 0 : index
    %85 = vector.load %arg1[%c0_76, %c1_77, %c1_78, %c0_79] : memref<1x18x18x128xf32, #tpu.memory_space<vmem>>, vector<1x16x16x128xf32>
    %86 = vector.shape_cast %85 : vector<1x16x16x128xf32> to vector<16x16x128xf32>
    %87 = vector.shape_cast %84 : vector<256x128xf32> to vector<16x16x128xf32>
    %88 = arith.addf %86, %87 : vector<16x16x128xf32>
    %c0_80 = arith.constant 0 : index
    %c0_81 = arith.constant 0 : index
    %c0_82 = arith.constant 0 : index
    %c0_83 = arith.constant 0 : index
    %89 = vector.load %arg4[%c0_80, %c0_81, %c0_82, %c0_83] : memref<1x16x16x128xf32, #tpu.memory_space<vmem>>, vector<1x16x16x128xf32>
    %90 = vector.shape_cast %89 : vector<1x16x16x128xf32> to vector<16x16x128xf32>
    %91 = vector.shape_cast %88 : vector<16x16x128xf32> to vector<1x16x16x128xf32>
    tpu.vector_store %arg4[%c0_80, %c0_81, %c0_82, %c0_83], %91 {strides = array<i32>} : memref<1x16x16x128xf32, #tpu.memory_space<vmem>>, vector<1x16x16x128xf32>,
    return
  }
  func.func @transform_0(%arg0: i32) -> (i32, i32, i32, i32) {
    %c0_i32 = arith.constant 0 : i32
    %c0_i32_0 = arith.constant 0 : i32
    %c0_i32_1 = arith.constant 0 : i32
    %c0_i32_2 = arith.constant 0 : i32
    return %arg0, %c0_i32, %c0_i32_0, %c0_i32_1 : i32, i32, i32, i32
  }
  func.func @transform_1(%arg0: i32) -> (i32, i32, i32) {
    %c0_i32 = arith.constant 0 : i32
    %c0_i32_0 = arith.constant 0 : i32
    %c0_i32_1 = arith.constant 0 : i32
    %c0_i32_2 = arith.constant 0 : i32
    return %c0_i32, %c0_i32_0, %c0_i32_1 : i32, i32, i32
  }
  func.func @transform_2(%arg0: i32) -> (i32, i32) {
    %c0_i32 = arith.constant 0 : i32
    %c0_i32_0 = arith.constant 0 : i32
    %c0_i32_1 = arith.constant 0 : i32
    return %c0_i32, %c0_i32_0 : i32, i32
  }
  func.func @transform_3(%arg0: i32) -> (i32, i32, i32, i32) {
    %c0_i32 = arith.constant 0 : i32
    %c0_i32_0 = arith.constant 0 : i32
    %c0_i32_1 = arith.constant 0 : i32
    %c0_i32_2 = arith.constant 0 : i32
    return %arg0, %c0_i32, %c0_i32_0, %c0_i32_1 : i32, i32, i32, i32
  }
}

</mosaic_0001>

<bundles_post_ra>
// kernel: tpu_custom_call.1
= control target key start
LH: loop header
LB: loop body
LE: loop exit
PB: predicated region body
PF: predicated region fallthrough
CT: control target
= control target key end

     0   :  { %8 = vsyncpa [#allocation4], 0  ;;  %s6641_s0 = inlined_call_operand.vmem [shape: f32[2,18,18,128], index: 0, kind: input, shape index: {}]   ;;  %s6642_s1 = inlined_call_operand.vmem [shape: bf16[9,128,128], index: 1, kind: input, shape index: {}]   ;;  %s6643_s2 = inlined_call_operand.vmem [shape: bf16[128,128], index: 2, kind: input, shape index: {}]   ;;  %s6644_s3 = inlined_call_operand.hbm [shape: f32[2,16,16,128], index: 3, kind: output, shape index: {}]  }
   0x1   :  { %10 = vsyncpa [#allocation4 + $0x1], 0  ;;  %s5244_s12 = smov 0   ;;  %s5246_s13 = smov 0  }
   0x2   :  { %s5248_s14 = smov 0   ;;  %s5250_s15 = smov 0  }
   0x3 LB: > { %s5265_s16 = sadd.s32 4294967295, %s5219_s15   ;;  %s4065_s17 = sadd.s32 4294967294, %s5219_s15   ;;  %s5219_s15 = sphi %s5250_s15, %s6704_s15   ;;  %s5215_s14 = sphi %s5248_s14, %s6703_s14   ;;  %s5211_s13 = sphi %s5246_s13, %s6702_s13   ;;  %s5207_s12 = sphi %s5244_s12, %s6701_s12  }
   0x4   : > { %s5269_s18 = sadd.s32 1, %s5219_s15   ;;  %s91_s19 = sadd.s32 1, %s5215_s14 }
   0x5   : > { %s88_s20 = ssub.s32 %s5219_s15, %s5269_s18  ;;  %p101_p0 = scmp.ne.s32.totalorder %s5215_s14, %s5211_s13 }
   0x6   : > { %p89_p1 = scmp.eq.s32.totalorder %s88_s20, 0  ;;  %p102_p2 = scmp.eq.s32.totalorder %s5265_s16, 1 }
   0x7   : > { %p107_p3 = scmp.ne.s32.totalorder %s5211_s13, %s5207_s12  ;;  %p108_p4 = scmp.eq.s32.totalorder %s4065_s17, 1 }
   0x8   : > { %s5280_s21 = scalar_select %p89_p1, %s5215_s14, %s91_s19  }
   0x9   : > { %p5282_p5 = por %p102_p2, %p101_p0  ;;  %p5286_p6 = por %p108_p4, %p107_p3 }
   0xa   : > { %p4068_p7 = scmp.ge.s32.totalorder %s5219_s15, 1  ;;  %p140_p8 = scmp.lt.s32.totalorder %s5219_s15, 3 }
   0xc   : > { %p141_p9 = pnand %p4068_p7, %p140_p8 }
   0xe   : > { %144 = sbr.rel (%p141_p9) target bundleno = 785 (0x311), region = 32 }
  0x13   : > { %v5079_v0 = vld [vmem:[%s6642_s1 + $0x38] sm:$0xff]   ;;  %p164_p10 = scmp.lt.s32.totalorder %s5265_s16, 1  ;;  %v5081_v2 = vld [vmem:[%s6642_s1 + $0x30] sm:$0xff]   ;;  %v5083_v4 = vld [vmem:[%s6642_s1 + $0x28] sm:$0xff]   ;;  %vm667_vm0 = vsmask.f32 7424 }
  0x14   : > { %v5080_v1 = vld [vmem:[%s6642_s1 + $0x78] sm:$0xff]   ;;  %4557 = vmatprep.subr.bf16.mxu0 %v5079_v0  ;;  %v5082_v3 = vld [vmem:[%s6642_s1 + $0x70] sm:$0xff]   ;;  %v5084_v5 = vld [vmem:[%s6642_s1 + $0x68] sm:$0xff]   ;;  %vm1230_vm1 = vcmask 1046528   ;;  %s161_s8 = sand.u32 1, %s5211_s13   ;;  %s4316_s11 = sshll.u32 %s5265_s16, 12 }
  0x15   : > { %4605 = vmatprep.subr.bf16.mxu1 %v5080_v1  ;;  %4558 = vmatpush3.bf16.msra.mxu0 %v5079_v0  ;;  %s165_s9 = scalar_select %p164_p10, %s5265_s16, 1  ;;  %v5085_v6 = vld [vmem:[%s6642_s1 + $0x20] sm:$0xff]   ;;  %v5087_v8 = vld [vmem:[%s6642_s1 + $0x18] sm:$0xff]   ;;  %v5089_v10 = vld [vmem:[%s6642_s1 + $0x10] sm:$0xff]  }
  0x16   : > { %4606 = vmatpush3.bf16.msra.mxu1 %v5080_v1  ;;  %4559 = vmatprep.subr.bf16.mxu0 %v5081_v2  ;;  %v5086_v7 = vld [vmem:[%s6642_s1 + $0x60] sm:$0xff]   ;;  %v5088_v9 = vld [vmem:[%s6642_s1 + $0x58] sm:$0xff]   ;;  %v5090_v14 = vld [vmem:[%s6642_s1 + $0x50] sm:$0xff]   ;;  %s6593_s24 = scalar_lea.hbm %s6644_s3, %s4316_s11  ;;  %s6601_s16 = scalar_lea.sflag [#allocation4], %s161_s8 }
  0x17   : > { %4607 = vmatprep.subr.bf16.mxu1 %v5082_v3  ;;  %s5037_s20 = smul.u32 432, %s165_s9  ;;  %v5091_v20 = vld [vmem:[%s6642_s1 + $0x8] sm:$0xff]   ;;  %v5093_v50 = vld [vmem:[%s6642_s1] sm:$0xff]   ;;  %s4069_s9 = sshll.u32 %s161_s8, 8 }
  0x18   : > { %v5092_v29 = vld [vmem:[%s6642_s1 + $0x48] sm:$0xff]   ;;  %v5094_v56 = vld [vmem:[%s6642_s1 + $0x40] sm:$0xff]   ;;  %s6527_s10 = scalar_lea.vmem [#allocation3], %s4069_s9  ;;  %s5221_s25 = smov [#allocation3]  }
  0x19   : > { %4560 = vmatpush3.bf16.msra.mxu0 %v5081_v2  ;;  %s5327_s30 = scalar_lea.vmem %s6641_s0, %s5037_s20  ;;  %s4003_s17 = sshll.u32 %s6527_s10, 4  ;;  %s6595_s17 = int_to_ptr.vmem [resolvable:$true] %s4003_s17 }
  0x1a   : > { %4608 = vmatpush3.bf16.msra.mxu1 %v5082_v3  ;;  %4561 = vmatprep.subr.bf16.mxu0 %v5083_v4  ;;  %v170_v11 = vld [vmem:[%s5327_s30] sm:$0xff]  ;;  %v171_v12 = vld [vmem:[%s5327_s30 + $0x8] sm:$0xff]  ;;  %v172_v13 = vld [vmem:[%s5327_s30 + $0x10] sm:$0x3]  ;;  %s5163_s26 = sshll.u32 %s5221_s25, 4  ;;  %s5164_s26 = int_to_ptr.vmem [resolvable:$false] %s5163_s26 }
  0x1b   : > { %4609 = vmatprep.subr.bf16.mxu1 %v5084_v5  ;;  %v224_v15 = vmax.f32 %v170_v11, 0.0  ;;  %v225_v16 = vmax.f32 %v171_v12, 0.0  ;;  %v226_v17 = vmax.f32 %v172_v13, 0.0  ;;  %v173_v18 = vld [vmem:[%s5327_s30 + $0x18] sm:$0xff]  ;;  %v174_v19 = vld [vmem:[%s5327_s30 + $0x20] sm:$0xff]  ;;  %v176_v27 = vld [vmem:[%s5327_s30 + $0x30] sm:$0xff]  ;;  %p5166_p0 = scmp.lt.s32.totalorder %s6595_s17, %s5164_s26 }
  0x1c   : > { %v227_v21 = vmax.f32 %v173_v18, 0.0  ;;  %v228_v22 = vmax.f32 %v174_v19, 0.0  ;;  %v175_v23 = vld [vmem:[%s5327_s30 + $0x28] sm:$0x3]  ;;  %v177_v28 = vld [vmem:[%s5327_s30 + $0x38] sm:$0xff]  ;;  %v230_v31 = vmax.f32 %v176_v27, 0.0 }
  0x1d   : > { %4562 = vmatpush3.bf16.msra.mxu0 %v5083_v4  ;;  %v5344_v24 = vpack.c.bf16 %v225_v16, %v224_v15  ;;  %v5346_v25 = vpack.c.bf16 %v226_v17, %v226_v17  ;;  %v229_v26 = vmax.f32 %v175_v23, 0.0  ;;  %v231_v32 = vmax.f32 %v177_v28, 0.0  ;;  %v178_v33 = vld [vmem:[%s5327_s30 + $0x40] sm:$0x3]  ;;  %v179_v34 = vld [vmem:[%s5327_s30 + $0x48] sm:$0xff]  ;;  %v180_v39 = vld [vmem:[%s5327_s30 + $0x50] sm:$0xff] }
  0x1e   : > { %4610 = vmatpush3.bf16.msra.mxu1 %v5084_v5  ;;  %4563 = vmatprep.subr.bf16.mxu0 %v5085_v6  ;;  %v5353_v30 = vpack.c.bf16 %v228_v22, %v227_v21  ;;  %v181_v40 = vld [vmem:[%s5327_s30 + $0x58] sm:$0x3]  ;;  %v232_v44 = vmax.f32 %v178_v33, 0.0  ;;  %v182_v45 = vld [vmem:[%s5327_s30 + $0x60] sm:$0xff]  ;;  %v233_v49 = vmax.f32 %v179_v34, 0.0  ;;  %v183_v55 = vld [vmem:[%s5327_s30 + $0x68] sm:$0xff] }
  0x1f   : > { %4611 = vmatprep.subr.bf16.mxu1 %v5086_v7  ;;  %4573 = vmatprep.mubr.bf16.mxu0 %v5344_v24  ;;  %v669_v35 = vshrl.u32 %v5344_v24, 16  ;;  %v671_v36 = vshll.u32 %v5344_v24, 16  ;;  %v676_v37 = vshll.u32 %v5346_v25, 16  ;;  %v5361_v38 = vpack.c.bf16 %v229_v26, %v229_v26  ;;  %v184_v61 = vld [vmem:[%s5327_s30 + $0x70] sm:$0x3]  ;;  %v185_v2 = vld [vmem:[%s5327_s30 + $0x78] sm:$0xff] }
  0x20   : > { %v681_v41 = vshrl.u32 %v5353_v30, 16  ;;  %v683_v42 = vshll.u32 %v5353_v30, 16  ;;  %v5367_v43 = vpack.c.bf16 %v231_v32, %v230_v31  ;;  %v5374_v52 = vpack.c.bf16 %v232_v44, %v232_v44  ;;  %v187_v12 = vld [vmem:[%s5327_s30 + $0x88] sm:$0x3]  ;;  %v188_v13 = vld [vmem:[%s5327_s30 + $0x90] sm:$0xff]  ;;  %v189_v18 = vld [vmem:[%s5327_s30 + $0x98] sm:$0xff] }
  0x21   : > { %4564 = vmatpush3.bf16.msra.mxu0 %v5085_v6  ;;  %v673_v46 = vrot.slane %v671_v36, 1  ;;  %v678_v47 = vrot.slane %v676_v37, 1  ;;  %v688_v48 = vshll.u32 %v5361_v38, 16  ;;  %v234_v59 = vmax.f32 %v180_v39, 0.0  ;;  %v190_v19 = vld [vmem:[%s5327_s30 + $0xa0] sm:$0x3] }
  0x22   : > { %4612 = vmatpush3.bf16.msra.mxu1 %v5086_v7  ;;  %4565 = vmatprep.subr.bf16.mxu0 %v5087_v8  ;;  %v685_v51 = vrot.slane %v683_v42, 1  ;;  %v693_v53 = vshrl.u32 %v5367_v43, 16  ;;  %v695_v54 = vshll.u32 %v5367_v43, 16  ;;  %v235_v60 = vmax.f32 %v181_v40, 0.0  ;;  %v186_v7 = vld [vmem:[%s5327_s30 + $0x80] sm:$0xff]  ;;  %v191_v40 = vld [vmem:[%s5327_s30 + $0xa8] sm:$0xff] }
  0x23   : > { %4613 = vmatprep.subr.bf16.mxu1 %v5088_v9  ;;  %v674_v57 = vor.u32 %v673_v46, %v669_v35  ;;  %v690_v58 = vrot.slane %v688_v48, 1  ;;  %v700_v0 = vshll.u32 %v5374_v52, 16  ;;  %v236_v1 = vmax.f32 %v182_v45, 0.0  ;;  %v5097_v46 = vld [vmem:[%s6642_s1 + $0xa8] sm:$0xff]   ;;  %s5165_s27 = scalar_lea.vmem %s5164_s26, 8192 }
  0x24   : > { %v686_v62 = vor.u32 %v685_v51, %v681_v41  ;;  %v697_v63 = vrot.slane %v695_v54, 1  ;;  %v5386_v4 = vpack.c.bf16 %v234_v59, %v233_v49  ;;  %v5388_v5 = vpack.c.bf16 %v235_v60, %v235_v60  ;;  %v192_v41 = vld [vmem:[%s5327_s30 + $0xb0] sm:$0xff]  ;;  %v193_v60 = vld [vmem:[%s5327_s30 + $0xb8] sm:$0x3] }
  0x25   : > { %4566 = vmatpush3.bf16.msra.mxu0 %v5087_v8  ;;  %v679_v3 = vsel %vm667_vm0, %v674_v57, %v678_v47  ;;  %v237_v6 = vmax.f32 %v183_v55, 0.0  ;;  %v5095_v8 = vld [vmem:[%s6642_s1 + $0xb8] sm:$0xff]   ;;  %v238_v11 = vmax.f32 %v184_v61, 0.0  ;;  %v239_v21 = vmax.f32 %v185_v2, 0.0  ;;  %v194_v47 = vld [vmem:[%s5327_s30 + $0xc0] sm:$0xff]  ;;  %v195_v55 = vld [vmem:[%s5327_s30 + $0xc8] sm:$0xff] }
  0x26   : > { %4614 = vmatpush3.bf16.msra.mxu1 %v5088_v9  ;;  %4567 = vmatprep.subr.bf16.mxu0 %v5089_v10  ;;  %v698_v9 = vor.u32 %v697_v63, %v693_v53  ;;  %v707_v15 = vshll.u32 %v5386_v4, 16  ;;  %v712_v16 = vshll.u32 %v5388_v5, 16  ;;  %v240_v22 = vmax.f32 %v186_v7, 0.0  ;;  %v197_v7 = vld [vmem:[%s5327_s30 + $0xd8] sm:$0xff] }
  0x27   : > { %4615 = vmatprep.subr.bf16.mxu1 %v5090_v14  ;;  %4621 = vmatprep.mubr.bf16.mxu1 %v679_v3  ;;  %v5399_v17 = vpack.c.bf16 %v237_v6, %v236_v1  ;;  %v5406_v23 = vsel %vm667_vm0, %v686_v62, %v690_v58  ;;  %v241_v33 = vmax.f32 %v187_v12, 0.0  ;;  %v242_v34 = vmax.f32 %v188_v13, 0.0  ;;  %v5098_v13 = vld [vmem:[%s6642_s1 + $0xa0] sm:$0xff]  }
  0x28   : > { %v709_v27 = vrot.slane %v707_v15, 1  ;;  %v5416_v32 = vpack.c.bf16 %v240_v22, %v239_v21  ;;  %v243_v37 = vmax.f32 %v189_v18, 0.0  ;;  %v244_v39 = vmax.f32 %v190_v19, 0.0  ;;  %v199_v19 = vld [vmem:[%s5327_s30 + $0xe8] sm:$0x3]  ;;  %v201_v21 = vld [vmem:[%s5327_s30 + $0xf8] sm:$0xff] }
  0x29   : > { %4568 = vmatpush3.bf16.msra.mxu0 %v5089_v10  ;;  %v702_v10 = vrot.slane %v700_v0, 1  ;;  %v719_v28 = vshll.u32 %v5399_v17, 16  ;;  %v717_v31 = vshrl.u32 %v5399_v17, 16  ;;  %v714_v44 = vrot.slane %v712_v16, 1  ;;  %v196_v0 = vld [vmem:[%s5327_s30 + $0xd0] sm:$0x3] }
  0x2a   : > { %4616 = vmatpush3.bf16.msra.mxu1 %v5090_v14  ;;  %4569 = vmatprep.subr.bf16.mxu0 %v5091_v20  ;;  %v705_v14 = vshrl.u32 %v5386_v4, 16  ;;  %v731_v45 = vshll.u32 %v5416_v32, 16  ;;  %v5428_v48 = vpack.c.bf16 %v241_v33, %v241_v33  ;;  %v5430_v49 = vpack.c.bf16 %v243_v37, %v242_v34  ;;  %v5103_v33 = vld [vmem:[%s6642_s1 + $0xe8] sm:$0xff]   ;;  %v5104_v34 = vld [vmem:[%s6642_s1 + $0xe0] sm:$0xff]  }
  0x2b   : > { %4617 = vmatprep.subr.bf16.mxu1 %v5092_v29  ;;  %v5409_v26 = vsel %vm667_vm0, %v698_v9, %v702_v10  ;;  %v721_v35 = vrot.slane %v719_v28, 1  ;;  %v5437_v51 = vpack.c.bf16 %v244_v39, %v244_v39  ;;  %v245_v53 = vmax.f32 %v191_v40, 0.0  ;;  %v202_v28 = vld [vmem:[%s5327_s30 + $0x100] sm:$0x3] }
  0x2c   : > { %v710_v42 = vor.u32 %v709_v27, %v705_v14  ;;  %v246_v54 = vmax.f32 %v192_v41, 0.0  ;;  %v743_v59 = vshll.u32 %v5430_v49, 16  ;;  %v729_v62 = vshrl.u32 %v5416_v32, 16  ;;  %v200_v14 = vld [vmem:[%s5327_s30 + $0xf0] sm:$0xff] }
  0x2d   : > { %4570 = vmatpush3.bf16.msra.mxu0 %v5091_v20  ;;  %v5403_v20 = vpack.c.bf16 %v238_v11, %v238_v11  ;;  %v722_v57 = vor.u32 %v721_v35, %v717_v31  ;;  %v733_v63 = vrot.slane %v731_v45, 1  ;;  %v736_v1 = vshll.u32 %v5428_v48, 16 }
  0x2e   : > { %4618 = vmatpush3.bf16.msra.mxu1 %v5092_v29  ;;  %4571 = vmatprep.subr.bf16.mxu0 %v5093_v50  ;;  %v5096_v29 = vld [vmem:[%s6642_s1 + $0xb0] sm:$0xff]   ;;  %v5446_v61 = vsel %vm667_vm0, %v710_v42, %v714_v44  ;;  %v741_v2 = vshrl.u32 %v5430_v49, 16  ;;  %v248_v3 = vmax.f32 %v194_v47, 0.0  ;;  %v249_v6 = vmax.f32 %v195_v55, 0.0  ;;  %v5099_v42 = vld [vmem:[%s6642_s1 + $0x98] sm:$0xff]   ;;  %v203_v55 = vld [vmem:[%s5327_s30 + $0x108] sm:$0xff] }
  0x2f   : > { %4619 = vmatprep.subr.bf16.mxu1 %v5094_v56  ;;  %v724_v36 = vshll.u32 %v5403_v20, 16  ;;  %v745_v9 = vrot.slane %v743_v59, 1  ;;  %v748_v10 = vshll.u32 %v5437_v51, 16  ;;  %v5455_v11 = vpack.c.bf16 %v246_v54, %v245_v53 }
  0x30   : > { %v247_v12 = vmax.f32 %v193_v60, 0.0  ;;  %v5464_v16 = vpack.c.bf16 %v249_v6, %v248_v3  ;;  %v250_v18 = vmax.f32 %v196_v0, 0.0  ;;  %v251_v22 = vmax.f32 %v197_v7, 0.0  ;;  %v207_v3 = vld [vmem:[%s5327_s30 + $0x128] sm:$0xff] }
  0x31   : > { %4572 = vmatpush3.bf16.msra.mxu0 %v5093_v50  ;;  %v5100_v50 = vld [vmem:[%s6642_s1 + $0xf8] sm:$0xff]   ;;  %v726_v58 = vrot.slane %v724_v36, 1  ;;  %v738_v31 = vrot.slane %v736_v1, 1  ;;  %v746_v35 = vor.u32 %v745_v9, %v741_v2  ;;  %v750_v36 = vrot.slane %v748_v10, 1  ;;  %v206_v2 = vld [vmem:[%s5327_s30 + $0x120] sm:$0xff] }
  0x32   : > { %4620 = vmatpush3.bf16.msra.mxu1 %v5094_v56  ;;  %4653 = vmatprep.subr.bf16.mxu0 %v5095_v8  ;;  %v5101_v56 = vld [vmem:[%s6642_s1 + $0xf0] sm:$0xff]   ;;  %v5479_v37 = vpack.c.bf16 %v247_v12, %v247_v12  ;;  %v755_v39 = vshll.u32 %v5455_v11, 16  ;;  %v5482_v40 = vpack.c.bf16 %v250_v18, %v250_v18  ;;  %v767_v41 = vshll.u32 %v5464_v16, 16  ;;  %v5106_v9 = vld [vmem:[%s6642_s1 + $0xd8] sm:$0xff]  }
  0x33   : > { %4701 = vmatprep.subr.bf16.mxu1 %v5100_v50  ;;  %v5462_v15 = vsel %vm667_vm0, %v722_v57, %v726_v58  ;;  %v254_v44 = vmax.f32 %v200_v14, 0.0  ;;  %v255_v45 = vmax.f32 %v201_v21, 0.0  ;;  %v253_v47 = vmax.f32 %v199_v19, 0.0  ;;  %v205_v19 = vld [vmem:[%s5327_s30 + $0x118] sm:$0x3] }
  0x34   : > { %4574 = vmatmul.mubr.bf16.vlgmr.msra.gmra.mxu0 %v5353_v30  ;;  %v753_v53 = vshrl.u32 %v5455_v11, 16  ;;  %v757_v58 = vrot.slane %v755_v39, 1  ;;  %v760_v59 = vshll.u32 %v5479_v37, 16  ;;  %v765_v60 = vshrl.u32 %v5464_v16, 16 }
  0x35   : > { %4622 = vmatmul.mubr.bf16.vlgmr.msra.gmra.mxu1 %v5406_v23  ;;  %4654 = vmatpush3.bf16.msra.mxu0 %v5095_v8  ;;  %v198_v8 = vld [vmem:[%s5327_s30 + $0xe0] sm:$0xff]  ;;  %v5491_v54 = vpack.c.bf16 %v255_v45, %v254_v44  ;;  %v769_v0 = vrot.slane %v767_v41, 1  ;;  %v772_v1 = vshll.u32 %v5482_v40, 16  ;;  %v5510_v6 = vpack.c.bf16 %v253_v47, %v253_v47  ;;  %v208_v41 = vld [vmem:[%s5327_s30 + $0x130] sm:$0x3]  ;;  %v209_v47 = vld [vmem:[%s5327_s30 + $0x138] sm:$0xff] }
  0x36   : > { %4577 = vmatprep.mubr.bf16.mxu0 %v5367_v43  ;;  %4625 = vmatprep.mubr.bf16.mxu1 %v5409_v26  ;;  %v252_v27 = vmax.f32 %v198_v8, 0.0  ;;  %v257_v12 = vmax.f32 %v203_v55, 0.0  ;;  %v758_v14 = vor.u32 %v757_v58, %v753_v53  ;;  %v762_v18 = vrot.slane %v760_v59, 1  ;;  %v210_v55 = vld [vmem:[%s5327_s30 + $0x140] sm:$0xff]  ;;  %v212_v59 = vld [vmem:[%s5327_s30 + $0x150] sm:$0xff] }
  0x37   : > { %4655 = vmatprep.subr.bf16.mxu0 %v5096_v29  ;;  %4702 = vmatpush3.bf16.msra.mxu1 %v5100_v50  ;;  %v256_v50 = vmax.f32 %v202_v28, 0.0  ;;  %v791_v10 = vshll.u32 %v5491_v54, 16  ;;  %v260_v21 = vmax.f32 %v206_v2, 0.0  ;;  %v770_v28 = vor.u32 %v769_v0, %v765_v60  ;;  %v5108_v60 = vld [vmem:[%s6642_s1 + $0x80] sm:$0xff]   ;;  %v5109_v0 = vld [vmem:[%s6642_s1 + $0xc8] sm:$0xff]  }
  0x38   : > { %4703 = vmatprep.subr.bf16.mxu1 %v5101_v56  ;;  %v259_v45 = vmax.f32 %v205_v19, 0.0  ;;  %v262_v58 = vmax.f32 %v208_v41, 0.0  ;;  %v264_v19 = vmax.f32 %v210_v55, 0.0 }
  0x39   : > { %4656 = vmatpush3.bf16.msra.mxu0 %v5096_v29  ;;  %v734_v29 = vor.u32 %v733_v63, %v729_v62  ;;  %v5102_v62 = vld [vmem:[%s6642_s1 + $0x90] sm:$0xff]   ;;  %v5504_v63 = vsel %vm667_vm0, %v746_v35, %v750_v36  ;;  %v5513_v8 = vpack.c.bf16 %v256_v50, %v256_v50  ;;  %v784_v35 = vshll.u32 %v5510_v6, 16 }
  0x3a   : > { %4657 = vmatprep.subr.bf16.mxu0 %v5097_v46  ;;  %v789_v36 = vshrl.u32 %v5491_v54, 16  ;;  %v5538_v50 = vsel %vm667_vm0, %v758_v14, %v762_v18  ;;  %v263_v18 = vmax.f32 %v209_v47, 0.0 }
  0x3b   : > { %4704 = vmatpush3.bf16.msra.mxu1 %v5101_v56  ;;  %v204_v56 = vld [vmem:[%s5327_s30 + $0x110] sm:$0xff]  ;;  %v5496_v57 = vsel %vm667_vm0, %v734_v29, %v738_v31  ;;  %v774_v29 = vrot.slane %v772_v1, 1  ;;  %v796_v39 = vshll.u32 %v5513_v8, 16  ;;  %v786_v1 = vrot.slane %v784_v35, 1  ;;  %v215_v35 = vld [vmem:[%s5327_s30 + $0x168] sm:$0xff] }
  0x3c   : > { %4578 = vmatmul.mubr.bf16.gmra.mxu0 %v5386_v4  ;;  %4705 = vmatprep.subr.bf16.mxu1 %v5103_v33 }
  0x3d   : > { %4626 = vmatmul.mubr.bf16.gmra.mxu1 %v5446_v61  ;;  %4581 = vmatprep.mubr.bf16.mxu0 %v5399_v17  ;;  %v798_v2 = vrot.slane %v796_v39, 1 }
  0x3e   : > { %4629 = vmatprep.mubr.bf16.mxu1 %v5462_v15  ;;  %4658 = vmatpush3.bf16.msra.mxu0 %v5097_v46  ;;  %v5488_v46 = vpack.c.bf16 %v252_v27, %v251_v22  ;;  %v261_v22 = vmax.f32 %v207_v3, 0.0  ;;  %v5107_v27 = vld [vmem:[%s6642_s1 + $0xd0] sm:$0xff]   ;;  %v211_v3 = vld [vmem:[%s5327_s30 + $0x148] sm:$0x3] }
  0x3f   : > { %4659 = vmatprep.subr.bf16.mxu0 %v5098_v13  ;;  %4706 = vmatpush3.bf16.msra.mxu1 %v5103_v33  ;;  %v5105_v33 = vld [vmem:[%s6642_s1 + $0x88] sm:$0xff]  }
  0x40   : > { %4707 = vmatprep.subr.bf16.mxu1 %v5104_v34  ;;  %v779_v7 = vshll.u32 %v5488_v46, 16  ;;  %v777_v31 = vshrl.u32 %v5488_v46, 16  ;;  %v5540_v53 = vpack.c.bf16 %v261_v22, %v260_v21  ;;  %v266_v21 = vmax.f32 %v212_v59, 0.0  ;;  %v214_v22 = vld [vmem:[%s5327_s30 + $0x160] sm:$0x3] }
  0x41   : > { %v5587_v59 = vpack.c.bf16 %v264_v19, %v263_v18 }
  0x42   : > { %4660 = vmatpush3.bf16.msra.mxu0 %v5098_v13  ;;  %v258_v13 = vmax.f32 %v204_v56, 0.0  ;;  %v5544_v56 = vsel %vm667_vm0, %v770_v28, %v774_v29  ;;  %v815_v14 = vshll.u32 %v5540_v53, 16  ;;  %v5572_v29 = vld [vmem:[%s6642_s1 + $0x138] sm:$0xff]   ;;  %v813_v55 = vshrl.u32 %v5540_v53, 16 }
  0x43   : > { %4661 = vmatprep.subr.bf16.mxu0 %v5099_v42  ;;  %4708 = vmatpush3.bf16.msra.mxu1 %v5104_v34  ;;  %v781_v34 = vrot.slane %v779_v7, 1  ;;  %v213_v7 = vld [vmem:[%s5327_s30 + $0x158] sm:$0xff] }
  0x44   : > { %4582 = vmatmul.mubr.bf16.gmra.mxu0 %v5416_v32  ;;  %4709 = vmatprep.subr.bf16.mxu1 %v5106_v9  ;;  %v5534_v44 = vpack.c.bf16 %v258_v13, %v257_v12  ;;  %v5110_v13 = vld [vmem:[%s6642_s1 + $0xc0] sm:$0xff]   ;;  %v267_v28 = vmax.f32 %v213_v7, 0.0 }
  0x45   : > { %4630 = vmatmul.mubr.bf16.gmra.mxu1 %v5496_v57  ;;  %4585 = vmatprep.mubr.bf16.mxu0 %v5430_v49 }
  0x46   : > { %4633 = vmatprep.mubr.bf16.mxu1 %v5504_v63  ;;  %4662 = vmatpush3.bf16.msra.mxu0 %v5099_v42  ;;  %v793_v42 = vrot.slane %v791_v10, 1  ;;  %v5558_v10 = vpack.c.bf16 %v259_v45, %v259_v45  ;;  %v803_v12 = vshll.u32 %v5534_v44, 16  ;;  %v1232_v45 = vrot.slane %v5346_v25, 1 }
  0x47   : > { %4663 = vmatprep.subr.bf16.mxu0 %v5102_v62  ;;  %4710 = vmatpush3.bf16.msra.mxu1 %v5106_v9 }
  0x48   : > { %4711 = vmatprep.subr.bf16.mxu1 %v5107_v27  ;;  %v794_v9 = vor.u32 %v793_v42, %v789_v36  ;;  %v216_v36 = vld [vmem:[%s5327_s30 + $0x170] sm:$0xff]  ;;  %v805_v39 = vrot.slane %v803_v12, 1  ;;  %v808_v41 = vshll.u32 %v5558_v10, 16  ;;  %v265_v42 = vmax.f32 %v211_v3, 0.0  ;;  %v5604_v12 = vld [vmem:[%s6642_s1 + $0x178] sm:$0xff]  }
  0x4a   : > { %4664 = vmatpush3.bf16.msra.mxu0 %v5102_v62  ;;  %v782_v62 = vor.u32 %v781_v34, %v777_v31  ;;  %v801_v34 = vshrl.u32 %v5534_v44, 16  ;;  %v5584_v47 = vsel %vm667_vm0, %v794_v9, %v798_v2  ;;  %v5597_v25 = vpack.c.bf16 %v265_v42, %v265_v42 }
  0x4b   : > { %4665 = vmatprep.subr.bf16.mxu0 %v5105_v33  ;;  %4712 = vmatpush3.bf16.msra.mxu1 %v5107_v27  ;;  %v5567_v27 = vpack.c.bf16 %v262_v58, %v262_v58  ;;  %v817_v58 = vrot.slane %v815_v14, 1  ;;  %v270_v2 = vmax.f32 %v216_v36, 0.0  ;;  %v810_v7 = vrot.slane %v808_v41, 1 }
  0x4c   : > { %4586 = vmatmul.mubr.bf16.gmra.mxu0 %v5455_v11  ;;  %4713 = vmatprep.subr.bf16.mxu1 %v5109_v0  ;;  %v5575_v31 = vsel %vm667_vm0, %v782_v62, %v786_v1  ;;  %v5590_v62 = vpack.c.bf16 %v267_v28, %v266_v21  ;;  %v806_v3 = vor.u32 %v805_v39, %v801_v34  ;;  %v827_v9 = vshll.u32 %v5587_v59, 16  ;;  %v217_v21 = vld [vmem:[%s5327_s30 + $0x178] sm:$0x3] }
  0x4d   : > { %4634 = vmatmul.mubr.bf16.gmra.mxu1 %v5538_v50  ;;  %4589 = vmatprep.mubr.bf16.mxu0 %v5464_v16 }
  0x4e   : > { %4637 = vmatprep.mubr.bf16.mxu1 %v5544_v56  ;;  %4666 = vmatpush3.bf16.msra.mxu0 %v5105_v33  ;;  %v1231_v33 = vrot.slane %v5344_v24, 1  ;;  %v268_v24 = vmax.f32 %v214_v22, 0.0  ;;  %v839_v19 = vshll.u32 %v5590_v62, 16  ;;  %v832_v22 = vshll.u32 %v5597_v25, 16 }
  0x4f   : > { %4667 = vmatprep.subr.bf16.mxu0 %v5108_v60  ;;  %4714 = vmatpush3.bf16.msra.mxu1 %v5109_v0  ;;  %v820_v0 = vshll.u32 %v5567_v27, 16  ;;  %v5615_v34 = vsel %vm667_vm0, %v806_v3, %v810_v7  ;;  %v829_v36 = vrot.slane %v827_v9, 1  ;;  %v837_v41 = vshrl.u32 %v5590_v62, 16 }
  0x50   : > { %4715 = vmatprep.subr.bf16.mxu1 %v5110_v13  ;;  %v1233_v1 = vsel %vm1230_vm1, %v1231_v33, %v1232_v45  ;;  %v5606_v18 = vpack.c.bf16 %v268_v24, %v268_v24  ;;  %v271_v33 = vmax.f32 %v217_v21, 0.0  ;;  %v841_v42 = vrot.slane %v839_v19, 1 }
  0x51   : > { %v822_v14 = vrot.slane %v820_v0, 1 }
  0x52   : > { %4668 = vmatpush3.bf16.msra.mxu0 %v5108_v60  ;;  %v269_v60 = vmax.f32 %v215_v35, 0.0  ;;  %v825_v35 = vshrl.u32 %v5587_v59, 16  ;;  %v844_v45 = vshll.u32 %v5606_v18, 16  ;;  %v5628_v24 = vpack.c.bf16 %v271_v33, %v271_v33 }
  0x53   : > { %4749 = vmatprep.subr.bf16.mxu0 %v5572_v29  ;;  %4716 = vmatpush3.bf16.msra.mxu1 %v5110_v13  ;;  %v818_v13 = vor.u32 %v817_v58, %v813_v55  ;;  %v834_v55 = vrot.slane %v832_v22, 1  ;;  %v1237_v33 = vrot.slane %v5367_v43, 1 }
  0x54   : > { %4590 = vmatmul.mubr.bf16.gmra.mxu0 %v5488_v46  ;;  %4797 = vmatprep.subr.bf16.mxu1 %v5604_v12  ;;  %v5612_v28 = vpack.c.bf16 %v270_v2, %v269_v60  ;;  %v830_v0 = vor.u32 %v829_v36, %v825_v35  ;;  %v842_v60 = vor.u32 %v841_v42, %v837_v41  ;;  %v846_v2 = vrot.slane %v844_v45, 1  ;;  %v5112_v45 = vld [vmem:[%s6642_s1 + $0x130] sm:$0xff]  }
  0x55   : > { %4638 = vmatmul.mubr.bf16.gmra.mxu1 %v5575_v31  ;;  %4593 = vmatprep.mubr.bf16.mxu0 %v5491_v54  ;;  %v5619_v39 = vsel %vm667_vm0, %v818_v13, %v822_v14  ;;  %v856_v13 = vshll.u32 %v5628_v24, 16  ;;  %v1234_v35 = vrot.slane %v5353_v30, 1  ;;  %v1235_v36 = vrot.slane %v5361_v38, 1  ;;  %v5113_v38 = vld [vmem:[%s6642_s1 + $0x128] sm:$0xff]  }
  0x56   : > { %4641 = vmatprep.mubr.bf16.mxu1 %v5584_v47  ;;  %v851_v58 = vshll.u32 %v5612_v28, 16  ;;  %v5631_v3 = vsel %vm667_vm0, %v830_v0, %v834_v55  ;;  %v849_v7 = vshrl.u32 %v5612_v28, 16  ;;  %v5636_v14 = vsel %vm667_vm0, %v842_v60, %v846_v2 }
  0x57   : > { %v858_v21 = vrot.slane %v856_v13, 1  ;;  %v1238_v41 = vrot.slane %v5374_v52, 1  ;;  %v5653_v42 = vsel %vm1230_vm1, %v1234_v35, %v1235_v36  ;;  %v1241_v52 = vrot.slane %v5388_v5, 1  ;;  %v5118_v36 = vld [vmem:[%s6642_s1 + $0x110] sm:$0xff]  }
  0x58   : > { %v853_v9 = vrot.slane %v851_v58, 1  ;;  %v1243_v58 = vrot.slane %v5399_v17, 1  ;;  %v1244_v0 = vrot.slane %v5403_v20, 1  ;;  %v1246_v60 = vrot.slane %v5416_v32, 1  ;;  %v5114_v20 = vld [vmem:[%s6642_s1 + $0x120] sm:$0xff]  }
  0x59   : > { %v5659_v55 = vsel %vm1230_vm1, %v1237_v33, %v1238_v41  ;;  %v1247_v2 = vrot.slane %v5428_v48, 1  ;;  %v5120_v48 = vld [vmem:[%s6642_s1 + $0x160] sm:$0xff]   ;;  %v1250_v13 = vrot.slane %v5437_v51, 1  ;;  %v5123_v51 = vld [vmem:[%s6642_s1 + $0x150] sm:$0xff]   ;;  %v1252_v33 = vrot.slane %v5455_v11, 1 }
  0x5a   : > { %v854_v19 = vor.u32 %v853_v9, %v849_v7  ;;  %v5689_v7 = vsel %vm1230_vm1, %v1243_v58, %v1244_v0  ;;  %v1249_v9 = vrot.slane %v5430_v49, 1  ;;  %v1253_v41 = vrot.slane %v5479_v37, 1  ;;  %v5126_v58 = vld [vmem:[%s6642_s1 + $0x140] sm:$0xff]  }
  0x5b   : > { %v1258_v0 = vrot.slane %v5488_v46, 1 }
  0x5c   : > { %4594 = vmatmul.mubr.bf16.gmra.mxu0 %v5534_v44  ;;  %v5643_v22 = vsel %vm667_vm0, %v854_v19, %v858_v21  ;;  %v5122_v19 = vld [vmem:[%s6642_s1 + $0x158] sm:$0xff]   ;;  %v5707_v21 = vsel %vm1230_vm1, %v1246_v60, %v1247_v2  ;;  %v5710_v35 = vsel %vm1230_vm1, %v1249_v9, %v1250_v13  ;;  %v5733_v37 = vsel %vm1230_vm1, %v1252_v33, %v1253_v41 }
  0x5d   : > { %4642 = vmatmul.mubr.bf16.gmra.mxu1 %v5615_v34  ;;  %4597 = vmatprep.mubr.bf16.mxu0 %v5540_v53  ;;  %v1259_v60 = vrot.slane %v5510_v6, 1  ;;  %v1261_v2 = vrot.slane %v5491_v54, 1  ;;  %v1265_v9 = vrot.slane %v5558_v10, 1  ;;  %v1267_v13 = vrot.slane %v5540_v53, 1 }
  0x5e   : > { %4645 = vmatprep.mubr.bf16.mxu1 %v5619_v39  ;;  %v1270_v10 = vrot.slane %v5587_v59, 1  ;;  %v1271_v33 = vrot.slane %v5597_v25, 1  ;;  %v1274_v41 = vrot.slane %v5606_v18, 1  ;;  %v1276_v25 = vrot.slane %v5612_v28, 1 }
  0x5f   : > { %v5759_v6 = vsel %vm1230_vm1, %v1258_v0, %v1259_v60 }
  0x64   : > { %4598 = vmatmul.mubr.bf16.gmra.mxu0 %v5587_v59 }
  0x65   : > { %4646 = vmatmul.mubr.bf16.gmra.mxu1 %v5631_v3  ;;  %4601 = vmatprep.mubr.bf16.mxu0 %v5590_v62 }
  0x66   : > { %4649 = vmatprep.mubr.bf16.mxu1 %v5636_v14 }
  0x6c   : > { %4602 = vmatmul.mubr.bf16.gmra.mxu0 %v5612_v28 }
  0x6d   : > { %4650 = vmatmul.mubr.bf16.gmra.mxu1 %v5643_v22  ;;  %4669 = vmatprep.mubr.bf16.mxu0 %v1233_v1  ;;  %v1240_v1 = vrot.slane %v5386_v4, 1 }
  0x6e   : > { %4717 = vmatprep.mubr.bf16.mxu1 %v5353_v30  ;;  %v5117_v30 = vld [vmem:[%s6642_s1 + $0x170] sm:$0xff]  }
  0x6f   : > { %v5683_v5 = vsel %vm1230_vm1, %v1240_v1, %v1241_v52  ;;  %v1256_v1 = vrot.slane %v5482_v40, 1  ;;  %v5124_v40 = vld [vmem:[%s6642_s1 + $0x100] sm:$0xff]  }
  0x74   : > { %4670 = vmatmul.mubr.bf16.vlgmr.msra.gmra.mxu0 %v5653_v42 }
  0x75   : > { %4750 = vmatpush3.bf16.msra.mxu0 %v5572_v29  ;;  %4718 = vmatmul.mubr.bf16.vlgmr.msra.gmra.mxu1 %v5367_v43  ;;  %v5119_v29 = vld [vmem:[%s6642_s1 + $0x168] sm:$0xff]  }
  0x76   : > { %4673 = vmatprep.mubr.bf16.mxu0 %v5659_v55  ;;  %4751 = vmatprep.subr.bf16.mxu0 %v5112_v45 }
  0x77   : > { %4721 = vmatprep.mubr.bf16.mxu1 %v5386_v4  ;;  %4798 = vmatpush3.bf16.msra.mxu1 %v5604_v12  ;;  %v5115_v12 = vld [vmem:[%s6642_s1 + $0x118] sm:$0xff]  }
  0x78   : > { %4799 = vmatprep.subr.bf16.mxu1 %v5117_v30 }
  0x79   : > { %4752 = vmatpush3.bf16.msra.mxu0 %v5112_v45  ;;  %v1255_v45 = vrot.slane %v5464_v16, 1 }
  0x7a   : > { %4753 = vmatprep.subr.bf16.mxu0 %v5113_v38 }
  0x7b   : > { %4800 = vmatpush3.bf16.msra.mxu1 %v5117_v30  ;;  %v5121_v30 = vld [vmem:[%s6642_s1 + $0x108] sm:$0xff]   ;;  %v5736_v52 = vsel %vm1230_vm1, %v1255_v45, %v1256_v1  ;;  %v5787_v45 = vsel %vm1230_vm1, %v1270_v10, %v1271_v33  ;;  %v5140_v33 = vld [vmem:[%s6642_s1 + $0x180] sm:$0xff]  }
  0x7c   : > { %4674 = vmatmul.mubr.bf16.gmra.mxu0 %v5683_v5  ;;  %4801 = vmatprep.subr.bf16.mxu1 %v5119_v29  ;;  %v5141_v10 = vld [vmem:[%s6642_s1 + $0x1c8] sm:$0xff]  }
  0x7d   : > { %4722 = vmatmul.mubr.bf16.gmra.mxu1 %v5399_v17  ;;  %4677 = vmatprep.mubr.bf16.mxu0 %v5689_v7 }
  0x7e   : > { %4725 = vmatprep.mubr.bf16.mxu1 %v5416_v32  ;;  %4754 = vmatpush3.bf16.msra.mxu0 %v5113_v38  ;;  %v5125_v38 = vld [vmem:[%s6642_s1 + $0x148] sm:$0xff]  }
  0x7f   : > { %4755 = vmatprep.subr.bf16.mxu0 %v5114_v20  ;;  %4802 = vmatpush3.bf16.msra.mxu1 %v5119_v29  ;;  %v1262_v29 = vrot.slane %v5513_v8, 1  ;;  %v1264_v8 = vrot.slane %v5534_v44, 1 }
  0x80   : > { %4803 = vmatprep.subr.bf16.mxu1 %v5120_v48 }
  0x82   : > { %4756 = vmatpush3.bf16.msra.mxu0 %v5114_v20  ;;  %v5127_v20 = vld [vmem:[%s6642_s1 + $0x1b8] sm:$0xff]  }
  0x83   : > { %4757 = vmatprep.subr.bf16.mxu0 %v5115_v12  ;;  %4804 = vmatpush3.bf16.msra.mxu1 %v5120_v48  ;;  %v5132_v48 = vld [vmem:[%s6642_s1 + $0x1f8] sm:$0xff]  }
  0x84   : > { %4678 = vmatmul.mubr.bf16.gmra.mxu0 %v5707_v21  ;;  %4805 = vmatprep.subr.bf16.mxu1 %v5122_v19 }
  0x85   : > { %4726 = vmatmul.mubr.bf16.gmra.mxu1 %v5430_v49  ;;  %4681 = vmatprep.mubr.bf16.mxu0 %v5710_v35 }
  0x86   : > { %4729 = vmatprep.mubr.bf16.mxu1 %v5455_v11  ;;  %4758 = vmatpush3.bf16.msra.mxu0 %v5115_v12  ;;  %v5762_v12 = vsel %vm1230_vm1, %v1261_v2, %v1262_v29  ;;  %v5133_v2 = vld [vmem:[%s6642_s1 + $0x1f0] sm:$0xff]   ;;  %v5130_v29 = vld [vmem:[%s6642_s1 + $0x1a0] sm:$0xff]  }
  0x87   : > { %4759 = vmatprep.subr.bf16.mxu0 %v5118_v36  ;;  %4806 = vmatpush3.bf16.msra.mxu1 %v5122_v19  ;;  %v1268_v19 = vrot.slane %v5567_v27, 1  ;;  %v1273_v27 = vrot.slane %v5590_v62, 1 }
  0x88   : > { %4807 = vmatprep.subr.bf16.mxu1 %v5123_v51 }
  0x89   : > { %v5790_v1 = vsel %vm1230_vm1, %v1273_v27, %v1274_v41  ;;  %v5142_v27 = vld [vmem:[%s6642_s1 + $0x1c0] sm:$0xff]   ;;  %v5143_v41 = vld [vmem:[%s6642_s1 + $0x238] sm:$0xff]  }
  0x8a   : > { %4760 = vmatpush3.bf16.msra.mxu0 %v5118_v36  ;;  %v5773_v36 = vsel %vm1230_vm1, %v1264_v8, %v1265_v9  ;;  %v5138_v8 = vld [vmem:[%s6642_s1 + $0x1d8] sm:$0xff]   ;;  %v5134_v9 = vld [vmem:[%s6642_s1 + $0x190] sm:$0xff]  }
  0x8b   : > { %4761 = vmatprep.subr.bf16.mxu0 %v5121_v30  ;;  %4808 = vmatpush3.bf16.msra.mxu1 %v5123_v51  ;;  %v5776_v51 = vsel %vm1230_vm1, %v1267_v13, %v1268_v19  ;;  %v5139_v13 = vld [vmem:[%s6642_s1 + $0x1d0] sm:$0xff]   ;;  %v5137_v19 = vld [vmem:[%s6642_s1 + $0x188] sm:$0xff]  }
  0x8c   : > { %4682 = vmatmul.mubr.bf16.gmra.mxu0 %v5733_v37  ;;  %4809 = vmatprep.subr.bf16.mxu1 %v5125_v38 }
  0x8d   : > { %4730 = vmatmul.mubr.bf16.gmra.mxu1 %v5464_v16  ;;  %4685 = vmatprep.mubr.bf16.mxu0 %v5736_v52 }
  0x8e   : > { %4733 = vmatprep.mubr.bf16.mxu1 %v5488_v46  ;;  %4762 = vmatpush3.bf16.msra.mxu0 %v5121_v30  ;;  %v218_v30 = vld [vmem:[%s5327_s30 + $0x180] sm:$0xff] }
  0x8f   : > { %4763 = vmatprep.subr.bf16.mxu0 %v5124_v40  ;;  %4810 = vmatpush3.bf16.msra.mxu1 %v5125_v38  ;;  %v219_v38 = vld [vmem:[%s5327_s30 + $0x188] sm:$0xff] }
  0x90   : > { %4811 = vmatprep.subr.bf16.mxu1 %v5126_v58  ;;  %v273_v18 = vmax.f32 %v219_v38, 0.0 }
  0x92   : > { %4764 = vmatpush3.bf16.msra.mxu0 %v5124_v40  ;;  %v1277_v40 = vrot.slane %v5628_v24, 1  ;;  %v5128_v24 = vld [vmem:[%s6642_s1 + $0x1b0] sm:$0xff]  }
  0x93   : > { %4812 = vmatpush3.bf16.msra.mxu1 %v5126_v58  ;;  %4845 = vmatprep.subr.bf16.mxu0 %v5127_v20  ;;  %v272_v58 = vmax.f32 %v218_v30, 0.0  ;;  %v220_v30 = vld [vmem:[%s5327_s30 + $0x190] sm:$0x3] }
  0x94   : > { %4686 = vmatmul.mubr.bf16.gmra.mxu0 %v5759_v6  ;;  %4893 = vmatprep.subr.bf16.mxu1 %v5132_v48  ;;  %v5801_v0 = vsel %vm1230_vm1, %v1276_v25, %v1277_v40  ;;  %v274_v38 = vmax.f32 %v220_v30, 0.0 }
  0x95   : > { %4734 = vmatmul.mubr.bf16.gmra.mxu1 %v5491_v54  ;;  %4689 = vmatprep.mubr.bf16.mxu0 %v5762_v12  ;;  %v5803_v60 = vpack.c.bf16 %v273_v18, %v272_v58 }
  0x96   : > { %4737 = vmatprep.mubr.bf16.mxu1 %v5534_v44  ;;  %v311_v25 = vpack.c.bf16 %v274_v38, %v274_v38 }
  0x97   : > { %v1942_v40 = vshll.u32 %v5803_v60, 16  ;;  %v1940_v58 = vshrl.u32 %v5803_v60, 16 }
  0x99   : > { %v1944_v18 = vrot.slane %v1942_v40, 1 }
  0x9c   : > { %4690 = vmatmul.mubr.bf16.gmra.mxu0 %v5773_v36 }
  0x9d   : > { %4738 = vmatmul.mubr.bf16.gmra.mxu1 %v5540_v53  ;;  %4693 = vmatprep.mubr.bf16.mxu0 %v5776_v51 }
  0x9e   : > { %4741 = vmatprep.mubr.bf16.mxu1 %v5587_v59 }
  0xa4   : > { %4694 = vmatmul.mubr.bf16.gmra.mxu0 %v5787_v45 }
  0xa5   : > { %4742 = vmatmul.mubr.bf16.gmra.mxu1 %v5590_v62  ;;  %4697 = vmatprep.mubr.bf16.mxu0 %v5790_v1 }
  0xa6   : > { %4745 = vmatprep.mubr.bf16.mxu1 %v5612_v28 }
  0xac   : > { %4698 = vmatmul.mubr.bf16.gmra.mxu0 %v5801_v0 }
  0xad   : > { %4746 = vmatmul.mubr.bf16.gmra.mxu1 %v5803_v60  ;;  %4765 = vmatprep.mubr.bf16.mxu0 %v5406_v23  ;;  %v5129_v23 = vld [vmem:[%s6642_s1 + $0x1a8] sm:$0xff]  }
  0xae   : > { %4813 = vmatprep.mubr.bf16.mxu1 %v5653_v42  ;;  %v5135_v42 = vld [vmem:[%s6642_s1 + $0x1e8] sm:$0xff]  }
  0xb4   : > { %4766 = vmatmul.mubr.bf16.vlgmr.msra.gmra.mxu0 %v5409_v26 }
  0xb5   : > { %4846 = vmatpush3.bf16.msra.mxu0 %v5127_v20  ;;  %4814 = vmatmul.mubr.bf16.vlgmr.msra.gmra.mxu1 %v5659_v55  ;;  %v5136_v20 = vld [vmem:[%s6642_s1 + $0x1e0] sm:$0xff]  }
  0xb6   : > { %4769 = vmatprep.mubr.bf16.mxu0 %v5446_v61  ;;  %4847 = vmatprep.subr.bf16.mxu0 %v5128_v24 }
  0xb7   : > { %4817 = vmatprep.mubr.bf16.mxu1 %v5683_v5  ;;  %4894 = vmatpush3.bf16.msra.mxu1 %v5132_v48  ;;  %v5131_v48 = vld [vmem:[%s6642_s1 + $0x198] sm:$0xff]  }
  0xb8   : > { %4895 = vmatprep.subr.bf16.mxu1 %v5133_v2 }
  0xb9   : > { %4848 = vmatpush3.bf16.msra.mxu0 %v5128_v24  ;;  %v1947_v24 = vshll.u32 %v311_v25, 16 }
  0xba   : > { %4849 = vmatprep.subr.bf16.mxu0 %v5129_v23 }
  0xbb   : > { %4896 = vmatpush3.bf16.msra.mxu1 %v5133_v2  ;;  %v1945_v2 = vor.u32 %v1944_v18, %v1940_v58 }
  0xbc   : > { %4770 = vmatmul.mubr.bf16.gmra.mxu0 %v5462_v15  ;;  %4897 = vmatprep.subr.bf16.mxu1 %v5135_v42 }
  0xbd   : > { %4818 = vmatmul.mubr.bf16.gmra.mxu1 %v5689_v7  ;;  %4773 = vmatprep.mubr.bf16.mxu0 %v5496_v57 }
  0xbe   : > { %4821 = vmatprep.mubr.bf16.mxu1 %v5707_v21  ;;  %4850 = vmatpush3.bf16.msra.mxu0 %v5129_v23  ;;  %v1949_v23 = vrot.slane %v1947_v24, 1  ;;  %v5147_v24 = vld [vmem:[%s6642_s1 + $0x218] sm:$0xff]  }
  0xbf   : > { %4851 = vmatprep.subr.bf16.mxu0 %v5130_v29  ;;  %4898 = vmatpush3.bf16.msra.mxu1 %v5135_v42  ;;  %v2276_v42 = vrot.slane %v5803_v60, 1 }
  0xc0   : > { %4899 = vmatprep.subr.bf16.mxu1 %v5136_v20 }
  0xc2   : > { %4852 = vmatpush3.bf16.msra.mxu0 %v5130_v29  ;;  %v2277_v29 = vrot.slane %v311_v25, 1 }
  0xc3   : > { %4853 = vmatprep.subr.bf16.mxu0 %v5131_v48  ;;  %4900 = vmatpush3.bf16.msra.mxu1 %v5136_v20  ;;  %v5887_v20 = vsel %vm667_vm0, %v1945_v2, %v1949_v23 }
  0xc4   : > { %4774 = vmatmul.mubr.bf16.gmra.mxu0 %v5504_v63  ;;  %4901 = vmatprep.subr.bf16.mxu1 %v5138_v8 }
  0xc5   : > { %4822 = vmatmul.mubr.bf16.gmra.mxu1 %v5710_v35  ;;  %4777 = vmatprep.mubr.bf16.mxu0 %v5538_v50 }
  0xc6   : > { %4825 = vmatprep.mubr.bf16.mxu1 %v5733_v37  ;;  %4854 = vmatpush3.bf16.msra.mxu0 %v5131_v48  ;;  %v5890_v48 = vsel %vm1230_vm1, %v2276_v42, %v2277_v29 }
  0xc7   : > { %4855 = vmatprep.subr.bf16.mxu0 %v5134_v9  ;;  %4902 = vmatpush3.bf16.msra.mxu1 %v5138_v8  ;;  %v5144_v8 = vld [vmem:[%s6642_s1 + $0x230] sm:$0xff]  }
  0xc8   : > { %4903 = vmatprep.subr.bf16.mxu1 %v5139_v13 }
  0xca   : > { %4856 = vmatpush3.bf16.msra.mxu0 %v5134_v9 }
  0xcb   : > { %4857 = vmatprep.subr.bf16.mxu0 %v5137_v19  ;;  %4904 = vmatpush3.bf16.msra.mxu1 %v5139_v13 }
  0xcc   : > { %4778 = vmatmul.mubr.bf16.gmra.mxu0 %v5544_v56  ;;  %4905 = vmatprep.subr.bf16.mxu1 %v5141_v10 }
  0xcd   : > { %4826 = vmatmul.mubr.bf16.gmra.mxu1 %v5736_v52  ;;  %4781 = vmatprep.mubr.bf16.mxu0 %v5575_v31 }
  0xce   : > { %4829 = vmatprep.mubr.bf16.mxu1 %v5759_v6  ;;  %4858 = vmatpush3.bf16.msra.mxu0 %v5137_v19 }
  0xcf   : > { %4859 = vmatprep.subr.bf16.mxu0 %v5140_v33  ;;  %4906 = vmatpush3.bf16.msra.mxu1 %v5141_v10 }
  0xd0   : > { %4907 = vmatprep.subr.bf16.mxu1 %v5142_v27 }
  0xd2   : > { %4860 = vmatpush3.bf16.msra.mxu0 %v5140_v33 }
  0xd3   : > { %4908 = vmatpush3.bf16.msra.mxu1 %v5142_v27  ;;  %4941 = vmatprep.subr.bf16.mxu0 %v5143_v41 }
  0xd4   : > { %4782 = vmatmul.mubr.bf16.gmra.mxu0 %v5584_v47 }
  0xd5   : > { %4830 = vmatmul.mubr.bf16.gmra.mxu1 %v5762_v12  ;;  %4785 = vmatprep.mubr.bf16.mxu0 %v5615_v34 }
  0xd6   : > { %4833 = vmatprep.mubr.bf16.mxu1 %v5773_v36 }
  0xdc   : > { %4786 = vmatmul.mubr.bf16.gmra.mxu0 %v5619_v39 }
  0xdd   : > { %4834 = vmatmul.mubr.bf16.gmra.mxu1 %v5776_v51  ;;  %4789 = vmatprep.mubr.bf16.mxu0 %v5631_v3 }
  0xde   : > { %4837 = vmatprep.mubr.bf16.mxu1 %v5787_v45 }
  0xe4   : > { %4790 = vmatmul.mubr.bf16.gmra.mxu0 %v5636_v14 }
  0xe5   : > { %4838 = vmatmul.mubr.bf16.gmra.mxu1 %v5790_v1  ;;  %4793 = vmatprep.mubr.bf16.mxu0 %v5643_v22 }
  0xe6   : > { %4841 = vmatprep.mubr.bf16.mxu1 %v5801_v0 }
  0xec   : > { %4794 = vmatmul.mubr.bf16.gmra.mxu0 %v5887_v20 }
  0xed   : > { %4842 = vmatmul.mubr.bf16.gmra.mxu1 %v5890_v48  ;;  %4861 = vmatprep.mubr.bf16.mxu0 %v5367_v43  ;;  %v5145_v43 = vld [vmem:[%s6642_s1 + $0x228] sm:$0xff]  }
  0xee   : > { %4909 = vmatprep.mubr.bf16.mxu1 %v5409_v26 }
  0xf4   : > { %v4575_v9 = vpop.f32.mrf.mxu0  ;;  %4862 = vmatmul.mubr.bf16.vlgmr.msra.gmra.mxu0 %v5386_v4 }
  0xf5   : > { %v4623_v13 = vpop.f32.mrf.mxu1  ;;  %4942 = vmatpush3.bf16.msra.mxu0 %v5143_v41  ;;  %4910 = vmatmul.mubr.bf16.vlgmr.msra.gmra.mxu1 %v5446_v61 }
  0xf6   : > { %v5901_v19 = vadd.f32 %v4623_v13, %v4575_v9  ;;  %v476_v10 = vpop.f32.mrf.mxu0  ;;  %4865 = vmatprep.mubr.bf16.mxu0 %v5399_v17  ;;  %4943 = vmatprep.subr.bf16.mxu0 %v5144_v8  ;;  %v5146_v17 = vld [vmem:[%s6642_s1 + $0x220] sm:$0xff]  }
  0xf7   : > { %v1007_v26 = vpop.f32.mrf.mxu1  ;;  %4913 = vmatprep.mubr.bf16.mxu1 %v5462_v15 }
  0xf8   : > { %v5908_v33 = vadd.f32 %v1007_v26, %v476_v10  ;;  %v4576_v4 = vpop.f32.mrf.mxu0  ;;  %v5149_v26 = vld [vmem:[%s6642_s1 + $0x208] sm:$0xff]  }
  0xf9   : > { %v4624_v27 = vpop.f32.mrf.mxu1  ;;  %4944 = vmatpush3.bf16.msra.mxu0 %v5144_v8 }
  0xfa   : > { %v5910_v41 = vadd.f32 %v4624_v27, %v4576_v4  ;;  %v479_v61 = vpop.f32.mrf.mxu0  ;;  %4945 = vmatprep.subr.bf16.mxu0 %v5145_v43 }
  0xfb   : > { %v1010_v30 = vpop.f32.mrf.mxu1 }
  0xfc   : > { %v5915_v38 = vadd.f32 %v1010_v30, %v479_v61  ;;  %v4579_v25 = vpop.f32.mrf.mxu0  ;;  %4866 = vmatmul.mubr.bf16.gmra.mxu0 %v5416_v32 }
  0xfd   : > { %v4627_v15 = vpop.f32.mrf.mxu1  ;;  %4914 = vmatmul.mubr.bf16.gmra.mxu1 %v5496_v57  ;;  %4869 = vmatprep.mubr.bf16.mxu0 %v5430_v49 }
  0xfe   : > { %v5920_v40 = vadd.f32 %v4627_v15, %v4579_v25  ;;  %v492_v58 = vpop.f32.mrf.mxu0  ;;  %4917 = vmatprep.mubr.bf16.mxu1 %v5504_v63  ;;  %4946 = vmatpush3.bf16.msra.mxu0 %v5145_v43  ;;  %v5148_v63 = vld [vmem:[%s6642_s1 + $0x210] sm:$0xff]  }
  0xff   : > { %v1023_v18 = vpop.f32.mrf.mxu1  ;;  %4947 = vmatprep.subr.bf16.mxu0 %v5146_v17 }
 0x100   : > { %v5926_v2 = vadd.f32 %v1023_v18, %v492_v58  ;;  %v4580_v32 = vpop.f32.mrf.mxu0 }
 0x101   : > { %v4628_v23 = vpop.f32.mrf.mxu1 }
 0x102   : > { %v5928_v42 = vadd.f32 %v4628_v23, %v4580_v32  ;;  %v495_v57 = vpop.f32.mrf.mxu0  ;;  %4948 = vmatpush3.bf16.msra.mxu0 %v5146_v17 }
 0x103   : > { %v1026_v49 = vpop.f32.mrf.mxu1  ;;  %4949 = vmatprep.subr.bf16.mxu0 %v5147_v24 }
 0x104   : > { %v5933_v29 = vadd.f32 %v1026_v49, %v495_v57  ;;  %v4583_v8 = vpop.f32.mrf.mxu0  ;;  %4870 = vmatmul.mubr.bf16.gmra.mxu0 %v5455_v11  ;;  %v221_v49 = vld [vmem:[%s5327_s30 + $0x198] sm:$0xff] }
 0x105   : > { %v4631_v9 = vpop.f32.mrf.mxu1  ;;  %4918 = vmatmul.mubr.bf16.gmra.mxu1 %v5538_v50  ;;  %4873 = vmatprep.mubr.bf16.mxu0 %v5464_v16 }
 0x106   : > { %v5938_v13 = vadd.f32 %v4631_v9, %v4583_v8  ;;  %v508_v10 = vpop.f32.mrf.mxu0  ;;  %4921 = vmatprep.mubr.bf16.mxu1 %v5544_v56  ;;  %4950 = vmatpush3.bf16.msra.mxu0 %v5147_v24  ;;  %v5150_v56 = vld [vmem:[%s6642_s1 + $0x200] sm:$0xff]  }
 0x107   : > { %v1039_v43 = vpop.f32.mrf.mxu1  ;;  %4951 = vmatprep.subr.bf16.mxu0 %v5148_v63 }
 0x108   : > { %v5944_v4 = vadd.f32 %v1039_v43, %v508_v10  ;;  %v4584_v11 = vpop.f32.mrf.mxu0  ;;  %v275_v43 = vmax.f32 %v221_v49, 0.0 }
 0x109   : > { %v4632_v27 = vpop.f32.mrf.mxu1 }
 0x10a   : > { %v5946_v61 = vadd.f32 %v4632_v27, %v4584_v11  ;;  %v511_v50 = vpop.f32.mrf.mxu0  ;;  %4952 = vmatpush3.bf16.msra.mxu0 %v5148_v63  ;;  %v223_v27 = vld [vmem:[%s5327_s30 + $0x1a8] sm:$0x3] }
 0x10b   : > { %v1042_v16 = vpop.f32.mrf.mxu1  ;;  %4953 = vmatprep.subr.bf16.mxu0 %v5149_v26 }
 0x10c   : > { %v5951_v30 = vadd.f32 %v1042_v16, %v511_v50  ;;  %v4587_v17 = vpop.f32.mrf.mxu0  ;;  %4874 = vmatmul.mubr.bf16.gmra.mxu0 %v5488_v46 }
 0x10d   : > { %v4635_v25 = vpop.f32.mrf.mxu1  ;;  %4922 = vmatmul.mubr.bf16.gmra.mxu1 %v5575_v31  ;;  %4877 = vmatprep.mubr.bf16.mxu0 %v5491_v54  ;;  %v222_v54 = vld [vmem:[%s5327_s30 + $0x1a0] sm:$0xff] }
 0x10e   : > { %v5956_v15 = vadd.f32 %v4635_v25, %v4587_v17  ;;  %v524_v58 = vpop.f32.mrf.mxu0  ;;  %4925 = vmatprep.mubr.bf16.mxu1 %v5584_v47  ;;  %4954 = vmatpush3.bf16.msra.mxu0 %v5149_v26  ;;  %v276_v26 = vmax.f32 %v222_v54, 0.0 }
 0x10f   : > { %v1055_v18 = vpop.f32.mrf.mxu1  ;;  %4955 = vmatprep.subr.bf16.mxu0 %v5150_v56 }
 0x110   : > { %v5959_v24 = vadd.f32 %v1055_v18, %v524_v58  ;;  %v4588_v32 = vpop.f32.mrf.mxu0 }
 0x111   : > { %v4636_v23 = vpop.f32.mrf.mxu1 }
 0x112   : > { %v5961_v46 = vadd.f32 %v4636_v23, %v4588_v32  ;;  %v527_v57 = vpop.f32.mrf.mxu0  ;;  %4956 = vmatpush3.bf16.msra.mxu0 %v5150_v56 }
 0x113   : > { %v1058_v31 = vpop.f32.mrf.mxu1 }
 0x114   : > { %v5965_v63 = vadd.f32 %v1058_v31, %v527_v57  ;;  %v4591_v8 = vpop.f32.mrf.mxu0  ;;  %4878 = vmatmul.mubr.bf16.gmra.mxu0 %v5534_v44 }
 0x115   : > { %v4639_v47 = vpop.f32.mrf.mxu1  ;;  %4926 = vmatmul.mubr.bf16.gmra.mxu1 %v5615_v34  ;;  %4881 = vmatprep.mubr.bf16.mxu0 %v5540_v53  ;;  %v5980_v34 = vpack.c.bf16 %v276_v26, %v275_v43  ;;  %v277_v53 = vmax.f32 %v223_v27, 0.0 }
 0x116   : > { %v5970_v9 = vadd.f32 %v4639_v47, %v4591_v8  ;;  %v540_v10 = vpop.f32.mrf.mxu0  ;;  %4929 = vmatprep.mubr.bf16.mxu1 %v5619_v39 }
 0x117   : > { %v1071_v11 = vpop.f32.mrf.mxu1  ;;  %v5990_v23 = vpack.c.bf16 %v277_v53, %v277_v53  ;;  %v2927_v57 = vshll.u32 %v5980_v34, 16 }
 0x118   : > { %v5974_v50 = vadd.f32 %v1071_v11, %v540_v10  ;;  %v4592_v16 = vpop.f32.mrf.mxu0 }
 0x119   : > { %v4640_v56 = vpop.f32.mrf.mxu1  ;;  %v2932_v10 = vshll.u32 %v5990_v23, 16 }
 0x11a   : > { %v5976_v17 = vadd.f32 %v4640_v56, %v4592_v16  ;;  %v5978_v44 = vpop.f32.mrf.mxu0 }
 0x11b   : > { %v5982_v25 = vpop.f32.mrf.mxu1  ;;  %v2934_v56 = vrot.slane %v2932_v10, 1 }
 0x11c   : > { %v4595_v58 = vpop.f32.mrf.mxu0  ;;  %4882 = vmatmul.mubr.bf16.gmra.mxu0 %v5587_v59 }
 0x11d   : > { %v4643_v39 = vpop.f32.mrf.mxu1  ;;  %4930 = vmatmul.mubr.bf16.gmra.mxu1 %v5631_v3  ;;  %4885 = vmatprep.mubr.bf16.mxu0 %v5590_v62  ;;  %v2925_v62 = vshrl.u32 %v5980_v34, 16  ;;  %v2929_v3 = vrot.slane %v2927_v57, 1 }
 0x11e   : > { %v5987_v18 = vadd.f32 %v4643_v39, %v4595_v58  ;;  %v556_v32 = vpop.f32.mrf.mxu0  ;;  %4933 = vmatprep.mubr.bf16.mxu1 %v5636_v14 }
 0x11f   : > { %v1087_v31 = vpop.f32.mrf.mxu1  ;;  %v2930_v16 = vor.u32 %v2929_v3, %v2925_v62 }
 0x120   : > { %v5993_v49 = vadd.f32 %v1087_v31, %v556_v32  ;;  %v4596_v54 = vpop.f32.mrf.mxu0 }
 0x121   : > { %v4644_v8 = vpop.f32.mrf.mxu1 }
 0x122   : > { %v5995_v59 = vadd.f32 %v4644_v8, %v4596_v54  ;;  %v5997_v47 = vpop.f32.mrf.mxu0 }
 0x123   : > { %v6001_v43 = vpop.f32.mrf.mxu1 }
 0x124   : > { %v4599_v14 = vpop.f32.mrf.mxu0  ;;  %4886 = vmatmul.mubr.bf16.gmra.mxu0 %v5612_v28 }
 0x125   : > { %v4647_v26 = vpop.f32.mrf.mxu1  ;;  %4934 = vmatmul.mubr.bf16.gmra.mxu1 %v5643_v22  ;;  %4889 = vmatprep.mubr.bf16.mxu0 %v5803_v60  ;;  %v2935_v22 = vsel %vm667_vm0, %v2930_v16, %v2934_v56 }
 0x126   : > { %v6006_v11 = vadd.f32 %v4647_v26, %v4599_v14  ;;  %v572_v27 = vpop.f32.mrf.mxu0  ;;  %4937 = vmatprep.mubr.bf16.mxu1 %v5887_v20 }
 0x127   : > { %v1103_v53 = vpop.f32.mrf.mxu1 }
 0x128   : > { %v6009_v58 = vadd.f32 %v1103_v53, %v572_v27  ;;  %v4600_v39 = vpop.f32.mrf.mxu0 }
 0x129   : > { %v4648_v32 = vpop.f32.mrf.mxu1 }
 0x12a   : > { %v6011_v57 = vadd.f32 %v4648_v32, %v4600_v39  ;;  %v6013_v28 = vpop.f32.mrf.mxu0 }
 0x12b   : > { %v6016_v31 = vpop.f32.mrf.mxu1 }
 0x12c   : > { %v4603_v60 = vpop.f32.mrf.mxu0  ;;  %4890 = vmatmul.mubr.bf16.gmra.mxu0 %v5980_v34 }
 0x12d   : > { %v4651_v54 = vpop.f32.mrf.mxu1  ;;  %4938 = vmatmul.mubr.bf16.gmra.mxu1 %v2935_v22  ;;  %4957 = vmatprep.mubr.bf16.mxu0 %v5659_v55 }
 0x12e   : > { %v6020_v20 = vadd.f32 %v4651_v54, %v4603_v60  ;;  %v588_v8 = vpop.f32.mrf.mxu0 }
 0x12f   : > { %v1119_v62 = vpop.f32.mrf.mxu1 }
 0x130   : > { %v6022_v3 = vadd.f32 %v1119_v62, %v588_v8  ;;  %v4604_v10 = vpop.f32.mrf.mxu0 }
 0x131   : > { %v4652_v14 = vpop.f32.mrf.mxu1 }
 0x132   : > { %v6024_v26 = vadd.f32 %v4652_v14, %v4604_v10  ;;  %v6026_v27 = vpop.f32.mrf.mxu0 }
 0x133   : > { %v6028_v16 = vpop.f32.mrf.mxu1 }
 0x134   : > { %v4671_v56 = vpop.f32.mrf.mxu0  ;;  %4958 = vmatmul.mubr.bf16.vlgmr.msra.gmra.mxu0 %v5683_v5 }
 0x135   : > { %v1555_v53 = vadd.f32 %v4671_v56, %v5901_v19  ;;  %v4719_v55 = vpop.f32.mrf.mxu1  ;;  %4961 = vmatprep.mubr.bf16.mxu0 %v5689_v7 }
 0x136   : > { %v1426_v39 = vpop.f32.mrf.mxu0 }
 0x137   : > { %v1553_v32 = vadd.f32 %v1426_v39, %v5908_v33  ;;  %v6034_v22 = vadd.f32 %v4719_v55, %v1555_v53  ;;  %v1748_v60 = vpop.f32.mrf.mxu1 }
 0x138   : > { %v4672_v54 = vpop.f32.mrf.mxu0 }
 0x139   : > { %v1556_v8 = vadd.f32 %v4672_v54, %v5910_v41  ;;  %v6037_v62 = vadd.f32 %v1748_v60, %v1553_v32  ;;  %v4720_v10 = vpop.f32.mrf.mxu1 }
 0x13a   : > { %v1429_v14 = vpop.f32.mrf.mxu0 }
 0x13b   : > { %v6040_v5 = vadd.f32 %v1429_v14, %v5915_v38  ;;  %v6042_v19 = vadd.f32 %v4720_v10, %v1556_v8  ;;  %v6044_v56 = vpop.f32.mrf.mxu1 }
 0x13c   : > { %v4675_v7 = vpop.f32.mrf.mxu0  ;;  %4962 = vmatmul.mubr.bf16.gmra.mxu0 %v5707_v21 }
 0x13d   : > { %v1559_v33 = vadd.f32 %v4675_v7, %v5920_v40  ;;  %v4723_v53 = vpop.f32.mrf.mxu1  ;;  %4965 = vmatprep.mubr.bf16.mxu0 %v5710_v35  ;;  %v5151_v35 = vld [vmem:[%s6643_s2 + $0x38] sm:$0xff]  }
 0x13e   : > { %v1442_v41 = vpop.f32.mrf.mxu0  ;;  %4989 = vmatprep.subr.bf16.mxu1 %v5151_v35 }
 0x13f   : > { %v1557_v55 = vadd.f32 %v1442_v41, %v5926_v2  ;;  %v6050_v39 = vadd.f32 %v4723_v53, %v1559_v33  ;;  %v1764_v32 = vpop.f32.mrf.mxu1  ;;  %4990 = vmatpush3.bf16.msra.mxu1 %v5151_v35 }
 0x140   : > { %v4676_v38 = vpop.f32.mrf.mxu0 }
 0x141   : > { %v1560_v60 = vadd.f32 %v4676_v38, %v5928_v42  ;;  %v6053_v54 = vadd.f32 %v1764_v32, %v1557_v55  ;;  %v4724_v8 = vpop.f32.mrf.mxu1 }
 0x142   : > { %v1445_v10 = vpop.f32.mrf.mxu0 }
 0x143   : > { %v6056_v21 = vadd.f32 %v1445_v10, %v5933_v29  ;;  %v6058_v40 = vadd.f32 %v4724_v8, %v1560_v60  ;;  %v6060_v14 = vpop.f32.mrf.mxu1 }
 0x144   : > { %v4679_v2 = vpop.f32.mrf.mxu0  ;;  %4966 = vmatmul.mubr.bf16.gmra.mxu0 %v5733_v37 }
 0x145   : > { %v1563_v42 = vadd.f32 %v4679_v2, %v5938_v13  ;;  %v4727_v7 = vpop.f32.mrf.mxu1  ;;  %4969 = vmatprep.mubr.bf16.mxu0 %v5736_v52 }
 0x146   : > { %v1458_v33 = vpop.f32.mrf.mxu0 }
 0x147   : > { %v1561_v29 = vadd.f32 %v1458_v33, %v5944_v4  ;;  %v6069_v53 = vadd.f32 %v4727_v7, %v1563_v42  ;;  %v1780_v41 = vpop.f32.mrf.mxu1  ;;  %v5152_v4 = vld [vmem:[%s6643_s2 + $0x30] sm:$0xff]  }
 0x148   : > { %v4680_v55 = vpop.f32.mrf.mxu0  ;;  %4991 = vmatprep.subr.bf16.mxu1 %v5152_v4 }
 0x149   : > { %v1564_v32 = vadd.f32 %v4680_v55, %v5946_v61  ;;  %v6072_v38 = vadd.f32 %v1780_v41, %v1561_v29  ;;  %v4728_v60 = vpop.f32.mrf.mxu1  ;;  %4992 = vmatpush3.bf16.msra.mxu1 %v5152_v4 }
 0x14a   : > { %v1461_v37 = vpop.f32.mrf.mxu0 }
 0x14b   : > { %v6075_v13 = vadd.f32 %v1461_v37, %v5951_v30  ;;  %v6077_v8 = vadd.f32 %v4728_v60, %v1564_v32  ;;  %v6079_v52 = vpop.f32.mrf.mxu1 }
 0x14c   : > { %v4683_v10 = vpop.f32.mrf.mxu0  ;;  %4970 = vmatmul.mubr.bf16.gmra.mxu0 %v5759_v6 }
 0x14d   : > { %v1567_v61 = vadd.f32 %v4683_v10, %v5956_v15  ;;  %v4731_v35 = vpop.f32.mrf.mxu1  ;;  %4973 = vmatprep.mubr.bf16.mxu0 %v5762_v12 }
 0x14e   : > { %v1474_v2 = vpop.f32.mrf.mxu0 }
 0x14f   : > { %v1565_v30 = vadd.f32 %v1474_v2, %v5959_v24  ;;  %v6088_v42 = vadd.f32 %v4731_v35, %v1567_v61  ;;  %v1796_v7 = vpop.f32.mrf.mxu1  ;;  %v5153_v24 = vld [vmem:[%s6643_s2 + $0x28] sm:$0xff]   ;;  %v1151_v2 = vadd.f32 %v5982_v25, %v5978_v44 }
 0x150   : > { %v4684_v33 = vpop.f32.mrf.mxu0  ;;  %4993 = vmatprep.subr.bf16.mxu1 %v5153_v24 }
 0x151   : > { %v1568_v29 = vadd.f32 %v4684_v33, %v5961_v46  ;;  %v6091_v41 = vadd.f32 %v1796_v7, %v1565_v30  ;;  %v4732_v55 = vpop.f32.mrf.mxu1  ;;  %4994 = vmatpush3.bf16.msra.mxu1 %v5153_v24 }
 0x152   : > { %v1477_v6 = vpop.f32.mrf.mxu0 }
 0x153   : > { %v6094_v15 = vadd.f32 %v1477_v6, %v5965_v63  ;;  %v6096_v32 = vadd.f32 %v4732_v55, %v1568_v29  ;;  %v6098_v12 = vpop.f32.mrf.mxu1 }
 0x154   : > { %v4687_v60 = vpop.f32.mrf.mxu0  ;;  %4974 = vmatmul.mubr.bf16.gmra.mxu0 %v5773_v36 }
 0x155   : > { %v1571_v46 = vadd.f32 %v4687_v60, %v5970_v9  ;;  %v4735_v37 = vpop.f32.mrf.mxu1  ;;  %4977 = vmatprep.mubr.bf16.mxu0 %v5776_v51 }
 0x156   : > { %v1490_v4 = vpop.f32.mrf.mxu0 }
 0x157   : > { %v1569_v63 = vadd.f32 %v1490_v4, %v5974_v50  ;;  %v6107_v10 = vadd.f32 %v4735_v37, %v1571_v46  ;;  %v1812_v61 = vpop.f32.mrf.mxu1  ;;  %v5154_v50 = vld [vmem:[%s6643_s2 + $0x20] sm:$0xff]   ;;  %v1155_v4 = vadd.f32 %v6001_v43, %v5997_v47  ;;  %v3261_v43 = vrot.slane %v5980_v34, 1 }
 0x158   : > { %v4688_v35 = vpop.f32.mrf.mxu0  ;;  %4995 = vmatprep.subr.bf16.mxu1 %v5154_v50 }
 0x159   : > { %v1572_v30 = vadd.f32 %v4688_v35, %v5976_v17  ;;  %v6112_v36 = vadd.f32 %v1812_v61, %v1569_v63  ;;  %v4736_v9 = vpop.f32.mrf.mxu1  ;;  %4996 = vmatpush3.bf16.msra.mxu1 %v5154_v50 }
 0x15a   : > { %v1493_v7 = vpop.f32.mrf.mxu0 }
 0x15b   : > { %v1570_v33 = vadd.f32 %v1493_v7, %v1151_v2  ;;  %v6114_v51 = vadd.f32 %v4736_v9, %v1572_v30  ;;  %v1815_v29 = vpop.f32.mrf.mxu1  ;;  %v3262_v7 = vrot.slane %v5990_v23, 1 }
 0x15c   : > { %v4691_v55 = vpop.f32.mrf.mxu0  ;;  %4978 = vmatmul.mubr.bf16.gmra.mxu0 %v5787_v45 }
 0x15d   : > { %v1575_v6 = vadd.f32 %v4691_v55, %v5987_v18  ;;  %v6121_v44 = vadd.f32 %v1815_v29, %v1570_v33  ;;  %v4739_v17 = vpop.f32.mrf.mxu1  ;;  %4981 = vmatprep.mubr.bf16.mxu0 %v5790_v1  ;;  %v3263_v34 = vsel %vm1230_vm1, %v3261_v43, %v3262_v7 }
 0x15e   : > { %v1506_v25 = vpop.f32.mrf.mxu0 }
 0x15f   : > { %v1573_v24 = vadd.f32 %v1506_v25, %v5993_v49  ;;  %v6125_v60 = vadd.f32 %v4739_v17, %v1575_v6  ;;  %v1828_v46 = vpop.f32.mrf.mxu1  ;;  %v5155_v49 = vld [vmem:[%s6643_s2 + $0x18] sm:$0xff]  }
 0x160   : > { %v4692_v37 = vpop.f32.mrf.mxu0  ;;  %4997 = vmatprep.subr.bf16.mxu1 %v5155_v49 }
 0x161   : > { %v1576_v45 = vadd.f32 %v4692_v37, %v5995_v59  ;;  %v6130_v18 = vadd.f32 %v1828_v46, %v1573_v24  ;;  %v4740_v63 = vpop.f32.mrf.mxu1  ;;  %4998 = vmatpush3.bf16.msra.mxu1 %v5155_v49 }
 0x162   : > { %v1509_v61 = vpop.f32.mrf.mxu0 }
 0x163   : > { %v1574_v35 = vadd.f32 %v1509_v61, %v1155_v4  ;;  %v6132_v1 = vadd.f32 %v4740_v63, %v1576_v45  ;;  %v1831_v2 = vpop.f32.mrf.mxu1 }
 0x164   : > { %v4695_v30 = vpop.f32.mrf.mxu0  ;;  %4982 = vmatmul.mubr.bf16.gmra.mxu0 %v5801_v0 }
 0x165   : > { %v1579_v9 = vadd.f32 %v4695_v30, %v6006_v11  ;;  %v6139_v47 = vadd.f32 %v1831_v2, %v1574_v35  ;;  %v4743_v59 = vpop.f32.mrf.mxu1  ;;  %4985 = vmatprep.mubr.bf16.mxu0 %v5890_v48  ;;  %v1159_v11 = vadd.f32 %v6016_v31, %v6013_v28  ;;  %v1163_v2 = vadd.f32 %v6028_v16, %v6026_v27 }
 0x166   : > { %v1522_v33 = vpop.f32.mrf.mxu0 }
 0x167   : > { %v1577_v29 = vadd.f32 %v1522_v33, %v6009_v58  ;;  %v6145_v50 = vadd.f32 %v4743_v59, %v1579_v9  ;;  %v1844_v55 = vpop.f32.mrf.mxu1  ;;  %v5156_v58 = vld [vmem:[%s6643_s2 + $0x10] sm:$0xff]  }
 0x168   : > { %v4696_v0 = vpop.f32.mrf.mxu0  ;;  %4999 = vmatprep.subr.bf16.mxu1 %v5156_v58 }
 0x169   : > { %v1580_v6 = vadd.f32 %v4696_v0, %v6011_v57  ;;  %v6150_v17 = vadd.f32 %v1844_v55, %v1577_v29  ;;  %v4744_v48 = vpop.f32.mrf.mxu1  ;;  %5000 = vmatpush3.bf16.msra.mxu1 %v5156_v58 }
 0x16a   : > { %v1525_v23 = vpop.f32.mrf.mxu0 }
 0x16b   : > { %v1578_v25 = vadd.f32 %v1525_v23, %v1159_v11  ;;  %v6153_v24 = vadd.f32 %v4744_v48, %v1580_v6  ;;  %v1847_v46 = vpop.f32.mrf.mxu1  ;;  %v1876_v48 = vadd.f32 %v6044_v56, %v6040_v5  ;;  %v5158_v5 = vld [vmem:[%s6643_s2] sm:$0xff]  }
 0x16c   : > { %v4699_v37 = vpop.f32.mrf.mxu0  ;;  %4986 = vmatmul.mubr.bf16.gmra.mxu0 %v3263_v34 }
 0x16d   : > { %v1583_v28 = vadd.f32 %v4699_v37, %v6020_v20  ;;  %v6159_v31 = vadd.f32 %v1847_v46, %v1578_v25  ;;  %v4747_v57 = vpop.f32.mrf.mxu1 }
 0x16e   : > { %v1538_v4 = vpop.f32.mrf.mxu0 }
 0x16f   : > { %v1581_v45 = vadd.f32 %v1538_v4, %v6022_v3  ;;  %v6162_v63 = vadd.f32 %v4747_v57, %v1583_v28  ;;  %v1860_v61 = vpop.f32.mrf.mxu1  ;;  %v5157_v3 = vld [vmem:[%s6643_s2 + $0x8] sm:$0xff]  }
 0x170   : > { %v4700_v35 = vpop.f32.mrf.mxu0  ;;  %5001 = vmatprep.subr.bf16.mxu1 %v5157_v3 }
 0x171   : > { %v1584_v49 = vadd.f32 %v4700_v35, %v6024_v26  ;;  %v6167_v30 = vadd.f32 %v1860_v61, %v1581_v45  ;;  %v4748_v20 = vpop.f32.mrf.mxu1  ;;  %5002 = vmatpush3.bf16.msra.mxu1 %v5157_v3  ;;  %v1880_v61 = vadd.f32 %v6060_v14, %v6056_v21 }
 0x172   : > { %v1541_v9 = vpop.f32.mrf.mxu0  ;;  %5003 = vmatprep.subr.bf16.mxu1 %v5158_v5 }
 0x173   : > { %v1582_v59 = vadd.f32 %v1541_v9, %v1163_v2  ;;  %v6169_v43 = vadd.f32 %v4748_v20, %v1584_v49  ;;  %v1863_v7 = vpop.f32.mrf.mxu1 }
 0x174   : > { %v4767_v33 = vpop.f32.mrf.mxu0 }
 0x175   : > { %v6174_v29 = vadd.f32 %v1863_v7, %v1582_v59  ;;  %v2212_v55 = vadd.f32 %v4767_v33, %v6034_v22  ;;  %v4815_v27 = vpop.f32.mrf.mxu1  ;;  %5004 = vmatpush3.bf16.msra.mxu1 %v5158_v5 }
 0x176   : > { %v2083_v26 = vpop.f32.mrf.mxu0 }
 0x177   : > { %v2210_v16 = vadd.f32 %v2083_v26, %v6037_v62  ;;  %v6178_v0 = vadd.f32 %v4815_v27, %v2212_v55  ;;  %v2411_v11 = vpop.f32.mrf.mxu1  ;;  %v1884_v55 = vadd.f32 %v6079_v52, %v6075_v13 }
 0x178   : > { %v4768_v6 = vpop.f32.mrf.mxu0 }
 0x179   : > { %v6183_v34 = vadd.f32 %v4768_v6, %v6042_v19  ;;  %v6185_v23 = vadd.f32 %v2411_v11, %v2210_v16  ;;  %v6187_v25 = vpop.f32.mrf.mxu1 }
 0x17a   : > { %v2086_v22 = vpop.f32.mrf.mxu0 }
 0x17b   : > { %v6189_v46 = vadd.f32 %v2086_v22, %v1876_v48  ;;  %v6191_v58 = vpop.f32.mrf.mxu1 }
 0x17c   : > { %v4771_v62 = vpop.f32.mrf.mxu0 }
 0x17d   : > { %v2216_v37 = vadd.f32 %v4771_v62, %v6050_v39  ;;  %v4819_v28 = vpop.f32.mrf.mxu1 }
 0x17e   : > { %v2099_v56 = vpop.f32.mrf.mxu0 }
 0x17f   : > { %v2214_v19 = vadd.f32 %v2099_v56, %v6053_v54  ;;  %v6198_v57 = vadd.f32 %v4819_v28, %v2216_v37  ;;  %v2427_v4 = vpop.f32.mrf.mxu1  ;;  %v1888_v28 = vadd.f32 %v6098_v12, %v6094_v15 }
 0x180   : > { %v4772_v45 = vpop.f32.mrf.mxu0 }
 0x181   : > { %v6203_v35 = vadd.f32 %v4772_v45, %v6058_v40  ;;  %v6205_v39 = vadd.f32 %v2427_v4, %v2214_v19  ;;  %v6207_v2 = vpop.f32.mrf.mxu1 }
 0x182   : > { %v2102_v49 = vpop.f32.mrf.mxu0 }
 0x183   : > { %v6209_v20 = vadd.f32 %v2102_v49, %v1880_v61  ;;  %v6211_v54 = vpop.f32.mrf.mxu1 }
 0x184   : > { %v4775_v9 = vpop.f32.mrf.mxu0 }
 0x185   : > { %v2220_v59 = vadd.f32 %v4775_v9, %v6069_v53  ;;  %v4823_v7 = vpop.f32.mrf.mxu1 }
 0x186   : > { %v2115_v3 = vpop.f32.mrf.mxu0 }
 0x187   : > { %v2218_v33 = vadd.f32 %v2115_v3, %v6072_v38  ;;  %v6215_v21 = vadd.f32 %v4823_v7, %v2220_v59  ;;  %v2443_v40 = vpop.f32.mrf.mxu1 }
 0x188   : > { %v4776_v14 = vpop.f32.mrf.mxu0 }
 0x189   : > { %v6220_v27 = vadd.f32 %v4776_v14, %v6077_v8  ;;  %v6222_v26 = vadd.f32 %v2443_v40, %v2218_v33  ;;  %v6224_v16 = vpop.f32.mrf.mxu1 }
 0x18a   : > { %v2118_v11 = vpop.f32.mrf.mxu0 }
 0x18b   : > { %v6226_v53 = vadd.f32 %v2118_v11, %v1884_v55  ;;  %v6228_v6 = vpop.f32.mrf.mxu1 }
 0x18c   : > { %v4779_v38 = vpop.f32.mrf.mxu0 }
 0x18d   : > { %v2224_v48 = vadd.f32 %v4779_v38, %v6088_v42  ;;  %v4827_v22 = vpop.f32.mrf.mxu1 }
 0x18e   : > { %v2131_v62 = vpop.f32.mrf.mxu0 }
 0x18f   : > { %v2222_v37 = vadd.f32 %v2131_v62, %v6091_v41  ;;  %v6232_v13 = vadd.f32 %v4827_v22, %v2224_v48  ;;  %v2459_v8 = vpop.f32.mrf.mxu1 }
 0x190   : > { %v4780_v52 = vpop.f32.mrf.mxu0 }
 0x191   : > { %v6237_v5 = vadd.f32 %v4780_v52, %v6096_v32  ;;  %v6239_v56 = vadd.f32 %v2459_v8, %v2222_v37  ;;  %v6241_v19 = vpop.f32.mrf.mxu1 }
 0x192   : > { %v2134_v4 = vpop.f32.mrf.mxu0 }
 0x193   : > { %v6243_v42 = vadd.f32 %v2134_v4, %v1888_v28  ;;  %v6245_v45 = vpop.f32.mrf.mxu1 }
 0x194   : > { %v4783_v41 = vpop.f32.mrf.mxu0 }
 0x195   : > { %v2228_v61 = vadd.f32 %v4783_v41, %v6107_v10  ;;  %v4831_v49 = vpop.f32.mrf.mxu1 }
 0x196   : > { %v2147_v9 = vpop.f32.mrf.mxu0 }
 0x197   : > { %v2226_v59 = vadd.f32 %v2147_v9, %v6112_v36  ;;  %v6249_v15 = vadd.f32 %v4831_v49, %v2228_v61  ;;  %v2475_v32 = vpop.f32.mrf.mxu1 }
 0x198   : > { %v4784_v12 = vpop.f32.mrf.mxu0 }
 0x199   : > { %v6252_v7 = vadd.f32 %v4784_v12, %v6114_v51  ;;  %v6254_v3 = vadd.f32 %v2475_v32, %v2226_v59  ;;  %v6256_v33 = vpop.f32.mrf.mxu1 }
 0x19a   : > { %v2150_v40 = vpop.f32.mrf.mxu0 }
 0x19b   : > { %v6259_v14 = vadd.f32 %v2150_v40, %v6121_v44  ;;  %v6261_v10 = vpop.f32.mrf.mxu1 }
 0x19c   : > { %v4787_v55 = vpop.f32.mrf.mxu0 }
 0x19d   : > { %v2232_v36 = vadd.f32 %v4787_v55, %v6125_v60  ;;  %v4835_v11 = vpop.f32.mrf.mxu1 }
 0x19e   : > { %v2163_v38 = vpop.f32.mrf.mxu0 }
 0x19f   : > { %v2230_v48 = vadd.f32 %v2163_v38, %v6130_v18  ;;  %v6265_v22 = vadd.f32 %v4835_v11, %v2232_v36  ;;  %v2491_v51 = vpop.f32.mrf.mxu1 }
 0x1a0   : > { %v4788_v62 = vpop.f32.mrf.mxu0 }
 0x1a1   : > { %v6268_v37 = vadd.f32 %v4788_v62, %v6132_v1  ;;  %v6270_v8 = vadd.f32 %v2491_v51, %v2230_v48  ;;  %v6272_v44 = vpop.f32.mrf.mxu1 }
 0x1a2   : > { %6648 = vst [vmem:[#allocation7_spill] sm:$0xff] %v6272_v44  ;;  %v2166_v52 = vpop.f32.mrf.mxu0 }
 0x1a3   : > { %6647 = vst [vmem:[#allocation6_spill] sm:$0xff] %v6268_v37  ;;  %v6275_v28 = vadd.f32 %v2166_v52, %v6139_v47  ;;  %v6277_v60 = vpop.f32.mrf.mxu1 }
 0x1a4   : > { %6650 = vst [vmem:[#allocation9_spill] sm:$0xff] %v6277_v60  ;;  %v4791_v4 = vpop.f32.mrf.mxu0 }
 0x1a5   : > { %6649 = vst [vmem:[#allocation8_spill] sm:$0xff] %v6275_v28  ;;  %v2236_v18 = vadd.f32 %v4791_v4, %v6145_v50  ;;  %v4839_v41 = vpop.f32.mrf.mxu1 }
 0x1a6   : > { %v2179_v61 = vpop.f32.mrf.mxu0 }
 0x1a7   : > { %v2234_v49 = vadd.f32 %v2179_v61, %v6150_v17  ;;  %v6281_v9 = vadd.f32 %v4839_v41, %v2236_v18  ;;  %v2507_v1 = vpop.f32.mrf.mxu1 }
 0x1a8   : > { %v4792_v59 = vpop.f32.mrf.mxu0 }
 0x1a9   : > { %v6284_v32 = vadd.f32 %v4792_v59, %v6153_v24  ;;  %v6286_v12 = vadd.f32 %v2507_v1, %v2234_v49  ;;  %v6288_v47 = vpop.f32.mrf.mxu1 }
 0x1aa   : > { %6652 = vst [vmem:[#allocation11_spill] sm:$0xff] %v6288_v47  ;;  %v2182_v40 = vpop.f32.mrf.mxu0 }
 0x1ab   : > { %6651 = vst [vmem:[#allocation10_spill] sm:$0xff] %v6284_v32  ;;  %v6291_v55 = vadd.f32 %v2182_v40, %v6159_v31  ;;  %v6293_v50 = vpop.f32.mrf.mxu1 }
 0x1ac   : > { %6654 = vst [vmem:[#allocation13_spill] sm:$0xff] %v6293_v50  ;;  %v4795_v36 = vpop.f32.mrf.mxu0 }
 0x1ad   : > { %6653 = vst [vmem:[#allocation12_spill] sm:$0xff] %v6291_v55  ;;  %v2240_v17 = vadd.f32 %v4795_v36, %v6162_v63  ;;  %v4843_v11 = vpop.f32.mrf.mxu1 }
 0x1ae   : > { %v2195_v38 = vpop.f32.mrf.mxu0 }
 0x1af   : > { %v2238_v48 = vadd.f32 %v2195_v38, %v6167_v30  ;;  %v6297_v51 = vadd.f32 %v4843_v11, %v2240_v17  ;;  %v2523_v24 = vpop.f32.mrf.mxu1 }
 0x1b0   : > { %v4796_v62 = vpop.f32.mrf.mxu0 }
 0x1b1   : > { %v6300_v52 = vadd.f32 %v4796_v62, %v6169_v43  ;;  %v6302_v4 = vadd.f32 %v2523_v24, %v2238_v48  ;;  %v6304_v31 = vpop.f32.mrf.mxu1 }
 0x1b2   : > { %6656 = vst [vmem:[#allocation15_spill] sm:$0xff] %v6304_v31  ;;  %v2198_v18 = vpop.f32.mrf.mxu0 }
 0x1b3   : > { %6655 = vst [vmem:[#allocation14_spill] sm:$0xff] %v6300_v52  ;;  %v6307_v41 = vadd.f32 %v2198_v18, %v6174_v29  ;;  %v6309_v63 = vpop.f32.mrf.mxu1 }
 0x1b4   : > { %6658 = vst [vmem:[#allocation17_spill] sm:$0xff] %v6309_v63  ;;  %v4863_v61 = vpop.f32.mrf.mxu0 }
 0x1b5   : > { %6657 = vst [vmem:[#allocation16_spill] sm:$0xff] %v6307_v41  ;;  %v6312_v30 = vadd.f32 %v4863_v61, %v6178_v0  ;;  %v6314_v49 = vpop.f32.mrf.mxu1 }
 0x1b6   : > { %v2733_v1 = vpop.f32.mrf.mxu0 }
 0x1b7   : > { %v6317_v43 = vadd.f32 %v2733_v1, %v6185_v23  ;;  %v6319_v59 = vpop.f32.mrf.mxu1 }
 0x1b8   : > { %v4864_v40 = vpop.f32.mrf.mxu0 }
 0x1b9   : > { %v6323_v17 = vpop.f32.mrf.mxu1 }
 0x1ba   : > { %v6321_v36 = vpop.f32.mrf.mxu0 }
 0x1bb   : > { %v6328_v38 = vpop.f32.mrf.mxu1 }
 0x1bc   : > { %v4867_v29 = vpop.f32.mrf.mxu0 }
 0x1bd   : > { %v6326_v11 = vadd.f32 %v4867_v29, %v6198_v57  ;;  %v6335_v23 = vpop.f32.mrf.mxu1 }
 0x1be   : > { %v2749_v0 = vpop.f32.mrf.mxu0 }
 0x1bf   : > { %v6331_v48 = vadd.f32 %v2749_v0, %v6205_v39  ;;  %v6342_v1 = vpop.f32.mrf.mxu1 }
 0x1c0   : > { %v6333_v24 = vpop.f32.mrf.mxu0 }
 0x1c1   : > { %v6349_v39 = vpop.f32.mrf.mxu1 }
 0x1c2   : > { %v6337_v62 = vpop.f32.mrf.mxu0 }
 0x1c3   : > { %v6356_v52 = vpop.f32.mrf.mxu1 }
 0x1c4   : > { %v4871_v18 = vpop.f32.mrf.mxu0 }
 0x1c5   : > { %v6340_v61 = vadd.f32 %v4871_v18, %v6215_v21 }
 0x1c6   : > { %v2765_v57 = vpop.f32.mrf.mxu0 }
 0x1c7   : > { %v6345_v29 = vadd.f32 %v2765_v57, %v6222_v26  ;;  %v6363_v26 = vpop.f32.mrf.mxu1 }
 0x1c8   : > { %v6347_v63 = vpop.f32.mrf.mxu0 }
 0x1c9   : > { %v6370_v32 = vpop.f32.mrf.mxu1 }
 0x1ca   : > { %v6351_v0 = vpop.f32.mrf.mxu0 }
 0x1cc   : > { %v4875_v41 = vpop.f32.mrf.mxu0 }
 0x1cd   : > { %v6354_v31 = vadd.f32 %v4875_v41, %v6232_v13 }
 0x1ce   : > { %v2781_v21 = vpop.f32.mrf.mxu0 }
 0x1cf   : > { %v6359_v18 = vadd.f32 %v2781_v21, %v6239_v56  ;;  %v6377_v56 = vpop.f32.mrf.mxu1 }
 0x1d0   : > { %v6361_v50 = vpop.f32.mrf.mxu0 }
 0x1d1   : > { %v6384_v37 = vpop.f32.mrf.mxu1 }
 0x1d2   : > { %v6365_v57 = vpop.f32.mrf.mxu0 }
 0x1d4   : > { %v4879_v55 = vpop.f32.mrf.mxu0 }
 0x1d5   : > { %v6368_v47 = vadd.f32 %v4879_v55, %v6249_v15 }
 0x1d6   : > { %v2797_v13 = vpop.f32.mrf.mxu0 }
 0x1d7   : > { %6659 = vst [vmem:[#allocation18_spill] sm:$0xff] %v6368_v47  ;;  %v6373_v41 = vadd.f32 %v2797_v13, %v6254_v3  ;;  %v6391_v3 = vpop.f32.mrf.mxu1 }
 0x1d8   : > { %v6375_v60 = vpop.f32.mrf.mxu0 }
 0x1d9   : > { %6660 = vst [vmem:[#allocation19_spill] sm:$0xff] %v6373_v41  ;;  %6661 = vst [vmem:[#allocation20_spill] sm:$0xff] %v6375_v60 }
 0x1da   : > { %v6379_v21 = vpop.f32.mrf.mxu0 }
 0x1db   : > { %6662 = vst [vmem:[#allocation21_spill] sm:$0xff] %v6379_v21  ;;  %v6398_v21 = vpop.f32.mrf.mxu1 }
 0x1dc   : > { %v4883_v28 = vpop.f32.mrf.mxu0 }
 0x1dd   : > { %v6382_v44 = vadd.f32 %v4883_v28, %v6265_v22 }
 0x1de   : > { %v2813_v15 = vpop.f32.mrf.mxu0 }
 0x1df   : > { %6663 = vst [vmem:[#allocation22_spill] sm:$0xff] %v6382_v44  ;;  %v6387_v55 = vadd.f32 %v2813_v15, %v6270_v8  ;;  %v6405_v8 = vpop.f32.mrf.mxu1 }
 0x1e0   : > { %v6389_v47 = vpop.f32.mrf.mxu0 }
 0x1e1   : > { %6664 = vst [vmem:[#allocation23_spill] sm:$0xff] %v6387_v55  ;;  %6665 = vst [vmem:[#allocation24_spill] sm:$0xff] %v6389_v47 }
 0x1e2   : > { %v6393_v13 = vpop.f32.mrf.mxu0 }
 0x1e3   : > { %6666 = vst [vmem:[#allocation25_spill] sm:$0xff] %v6393_v13  ;;  %v6412_v13 = vpop.f32.mrf.mxu1 }
 0x1e4   : > { %v4887_v41 = vpop.f32.mrf.mxu0 }
 0x1e5   : > { %v6396_v60 = vadd.f32 %v4887_v41, %v6281_v9 }
 0x1e6   : > { %v2829_v22 = vpop.f32.mrf.mxu0 }
 0x1e7   : > { %6667 = vst [vmem:[#allocation26_spill] sm:$0xff] %v6396_v60  ;;  %v6401_v28 = vadd.f32 %v2829_v22, %v6286_v12  ;;  %v2541_v12 = vadd.f32 %v6187_v25, %v6183_v34  ;;  %v6421_v22 = vpop.f32.mrf.mxu1  ;;  %v3195_v34 = vadd.f32 %v6319_v59, %v6317_v43 }
 0x1e8   : > { %v6403_v44 = vpop.f32.mrf.mxu0 }
 0x1e9   : > { %6668 = vst [vmem:[#allocation27_spill] sm:$0xff] %v6401_v28 }
 0x1ea   : > { %v6407_v15 = vpop.f32.mrf.mxu0 }
 0x1eb   : > { %6669 = vst [vmem:[#allocation28_spill] sm:$0xff] %v6407_v15  ;;  %v2539_v15 = vadd.f32 %v6191_v58, %v6189_v46  ;;  %v2545_v46 = vadd.f32 %v6207_v2, %v6203_v35 }
 0x1ec   : > { %v4891_v55 = vpop.f32.mrf.mxu0 }
 0x1ed   : > { %v6410_v47 = vadd.f32 %v4891_v55, %v6297_v51  ;;  %v2863_v51 = vadd.f32 %v4864_v40, %v2541_v12 }
 0x1ee   : > { %v2845_v9 = vpop.f32.mrf.mxu0 }
 0x1ef   : > { %6670 = vst [vmem:[#allocation29_spill] sm:$0xff] %v6410_v47  ;;  %v6415_v41 = vadd.f32 %v2845_v9, %v6302_v4  ;;  %v3197_v47 = vadd.f32 %v6314_v49, %v6312_v30  ;;  %v2861_v4 = vadd.f32 %v6321_v36, %v2539_v15  ;;  %v6430_v9 = vpop.f32.mrf.mxu1  ;;  %v3198_v25 = vadd.f32 %v6323_v17, %v2863_v51 }
 0x1f0   : > { %v6417_v60 = vpop.f32.mrf.mxu0  ;;  %v2543_v30 = vadd.f32 %v6211_v54, %v6209_v20  ;;  %v2867_v15 = vadd.f32 %v6333_v24, %v2545_v46  ;;  %v3199_v54 = vadd.f32 %v6342_v1, %v6331_v48 }
 0x1f1   : > { %6671 = vst [vmem:[#allocation30_spill] sm:$0xff] %v6415_v41  ;;  %6672 = vst [vmem:[#allocation31_spill] sm:$0xff] %v6417_v60  ;;  %v3196_v58 = vadd.f32 %v6328_v38, %v2861_v4  ;;  %v6440_v49 = vpop.f32.mrf.mxu1 }
 0x1f2   : > { %v6423_v28 = vpop.f32.mrf.mxu0  ;;  %v2865_v35 = vadd.f32 %v6337_v62, %v2543_v30  ;;  %v3202_v24 = vadd.f32 %v6349_v39, %v2867_v15 }
 0x1f3   : > { %6673 = vst [vmem:[#allocation32_spill] sm:$0xff] %v6423_v28 }
 0x1f4   : > { %v4959_v55 = vpop.f32.mrf.mxu0 }
 0x1f5   : > { %v3525_v60 = vadd.f32 %v4959_v55, %v3197_v47  ;;  %v3201_v47 = vadd.f32 %v6335_v23, %v6326_v11  ;;  %v2549_v11 = vadd.f32 %v6224_v16, %v6220_v27  ;;  %v3200_v23 = vadd.f32 %v6356_v52, %v2865_v35 }
 0x1f6   : > { %v3396_v41 = vpop.f32.mrf.mxu0  ;;  %v3205_v27 = vadd.f32 %v6363_v26, %v6340_v61  ;;  %v2553_v61 = vadd.f32 %v6241_v19, %v6237_v5  ;;  %v3209_v5 = vadd.f32 %v6391_v3, %v6354_v31 }
 0x1f7   : > { %v3523_v40 = vadd.f32 %v3396_v41, %v3195_v34  ;;  %v3621_v43 = vmax.f32 %v3525_v60, 0.0  ;;  %v6446_v41 = vpop.f32.mrf.mxu1  ;;  %v2871_v48 = vadd.f32 %v6347_v63, %v2549_v11  ;;  %v2557_v11 = vadd.f32 %v6256_v33, %v6252_v7  ;;  %v6676_v33 = vld [vmem:[#allocation21_spill] sm:$0xff] }
 0x1f8   : > { %v4960_v28 = vpop.f32.mrf.mxu0 }
 0x1f9   : > { %v3526_v12 = vadd.f32 %v4960_v28, %v3198_v25  ;;  %v3619_v2 = vmax.f32 %v3523_v40, 0.0  ;;  %v2547_v25 = vadd.f32 %v6228_v6, %v6226_v53  ;;  %v6456_v46 = vpop.f32.mrf.mxu1  ;;  %v3203_v6 = vadd.f32 %v6370_v32, %v6345_v29 }
 0x1fa   : > { %v3399_v36 = vpop.f32.mrf.mxu0  ;;  %v3206_v63 = vadd.f32 %v6377_v56, %v2871_v48  ;;  %v2875_v32 = vadd.f32 %v6361_v50, %v2553_v61  ;;  %v6675_v48 = vld [vmem:[#allocation18_spill] sm:$0xff]  ;;  %v6680_v61 = vld [vmem:[#allocation8_spill] sm:$0xff] }
 0x1fb   : > { %v3622_v59 = vmax.f32 %v3526_v12, 0.0  ;;  %v3524_v17 = vadd.f32 %v3399_v36, %v3196_v58  ;;  %v2869_v52 = vadd.f32 %v6351_v0, %v2547_v25  ;;  %v6462_v15 = vpop.f32.mrf.mxu1 }
 0x1fc   : > { %v4963_v51 = vpop.f32.mrf.mxu0 }
 0x1fd   : > { %v3652_v38 = vpack.c.bf16 %v3622_v59, %v3621_v43  ;;  %v3620_v28 = vmax.f32 %v3524_v17, 0.0  ;;  %v3529_v55 = vadd.f32 %v4963_v51, %v3201_v47  ;;  %v3204_v26 = vadd.f32 %v6384_v37, %v2869_v52  ;;  %v6472_v35 = vpop.f32.mrf.mxu1 }
 0x1fe   : > { %v3412_v20 = vpop.f32.mrf.mxu0  ;;  %v2551_v51 = vadd.f32 %v6245_v45, %v6243_v42  ;;  %v3207_v45 = vadd.f32 %v6398_v21, %v6359_v18  ;;  %v6674_v18 = vld [vmem:[#allocation20_spill] sm:$0xff] }
 0x1ff   : > { %v3651_v60 = vpack.c.bf16 %v3620_v28, %v3619_v2  ;;  %v3527_v62 = vadd.f32 %v3412_v20, %v3199_v54  ;;  %v3625_v1 = vmax.f32 %v3529_v55, 0.0  ;;  %v2879_v21 = vadd.f32 %v6674_v18, %v2557_v11  ;;  %v6688_v18 = vld [vmem:[#allocation12_spill] sm:$0xff] }
 0x200   : > { %v4964_v4 = vpop.f32.mrf.mxu0  ;;  %v2873_v37 = vadd.f32 %v6365_v57, %v2551_v51 }
 0x201   : > { %v3530_v34 = vadd.f32 %v4964_v4, %v3202_v24  ;;  %5005 = vmatprep.mubr.bf16.mxu1 %v3651_v60  ;;  %v3623_v12 = vmax.f32 %v3527_v62, 0.0  ;;  %v3151_v24 = vpop.f32.mrf.mxu1  ;;  %v3210_v60 = vadd.f32 %v6405_v8, %v2875_v32 }
 0x202   : > { %v3415_v58 = vpop.f32.mrf.mxu0  ;;  %5006 = vmatmul.mubr.bf16.vlgmr.msra.gmra.mxu1 %v3652_v38  ;;  %v3208_v31 = vadd.f32 %v6412_v13, %v2873_v37 }
 0x203   : > { %v3626_v39 = vmax.f32 %v3530_v34, 0.0  ;;  %v3528_v40 = vadd.f32 %v3415_v58, %v3200_v23  ;;  %v2555_v23 = vadd.f32 %v6261_v10, %v6259_v14  ;;  %v4935_v62 = vpop.f32.mrf.mxu1  ;;  %v6677_v14 = vld [vmem:[#allocation19_spill] sm:$0xff] }
 0x204   : > { %v4967_v16 = vpop.f32.mrf.mxu0  ;;  %v3211_v10 = vadd.f32 %v6430_v9, %v6677_v14  ;;  %v6682_v9 = vld [vmem:[#allocation24_spill] sm:$0xff] }
 0x205   : > { %v3654_v30 = vpack.c.bf16 %v3626_v39, %v3625_v1  ;;  %v3624_v36 = vmax.f32 %v3528_v40, 0.0  ;;  %v3533_v59 = vadd.f32 %v4967_v16, %v3205_v27  ;;  %v3213_v1 = vadd.f32 %v6421_v22, %v6675_v48  ;;  %v3164_v16 = vpop.f32.mrf.mxu1 }
 0x206   : > { %v3428_v53 = vpop.f32.mrf.mxu0  ;;  %v2877_v13 = vadd.f32 %v6676_v33, %v2555_v23 }
 0x207   : > { %v3653_v43 = vpack.c.bf16 %v3624_v36, %v3623_v12  ;;  %v3531_v0 = vadd.f32 %v3428_v53, %v3203_v6  ;;  %v3629_v29 = vmax.f32 %v3533_v59, 0.0  ;;  %v3214_v12 = vadd.f32 %v6440_v49, %v2879_v21  ;;  %v6678_v6 = vld [vmem:[#allocation6_spill] sm:$0xff]  ;;  %v6689_v21 = vld [vmem:[#allocation13_spill] sm:$0xff] }
 0x208   : > { %v4968_v17 = vpop.f32.mrf.mxu0  ;;  %v3212_v22 = vadd.f32 %v6446_v41, %v2877_v13 }
 0x209   : > { %v3534_v47 = vadd.f32 %v4968_v17, %v3206_v63  ;;  %5009 = vmatprep.mubr.bf16.mxu1 %v3653_v43  ;;  %v3627_v28 = vmax.f32 %v3531_v0, 0.0  ;;  %v6679_v63 = vld [vmem:[#allocation7_spill] sm:$0xff] }
 0x20a   : > { %v3431_v2 = vpop.f32.mrf.mxu0  ;;  %5010 = vmatmul.mubr.bf16.gmra.mxu1 %v3654_v30  ;;  %v2561_v43 = vadd.f32 %v6679_v63, %v6678_v6 }
 0x20b   : > { %v3630_v56 = vmax.f32 %v3534_v47, 0.0  ;;  %v3532_v38 = vadd.f32 %v3431_v2, %v3204_v26  ;;  %v6681_v26 = vld [vmem:[#allocation9_spill] sm:$0xff]  ;;  %v4936_v47 = vpop.f32.mrf.mxu1 }
 0x20c   : > { %v4971_v19 = vpop.f32.mrf.mxu0  ;;  %v2559_v0 = vadd.f32 %v6681_v26, %v6680_v61  ;;  %v2883_v2 = vadd.f32 %v6682_v9, %v2561_v43  ;;  %v6694_v43 = vld [vmem:[#allocation15_spill] sm:$0xff]  ;;  %v6695_v61 = vld [vmem:[#allocation16_spill] sm:$0xff]  ;;  %v6696_v26 = vld [vmem:[#allocation17_spill] sm:$0xff] }
 0x20d   : > { %v3656_v20 = vpack.c.bf16 %v3630_v56, %v3629_v29  ;;  %v3628_v54 = vmax.f32 %v3532_v38, 0.0  ;;  %v3537_v55 = vadd.f32 %v4971_v19, %v3209_v5  ;;  %v6683_v56 = vld [vmem:[#allocation22_spill] sm:$0xff]  ;;  %v6684_v19 = vld [vmem:[#allocation25_spill] sm:$0xff] }
 0x20e   : > { %v3444_v42 = vpop.f32.mrf.mxu0  ;;  %v3217_v38 = vadd.f32 %v6456_v46, %v6683_v56  ;;  %v2881_v41 = vadd.f32 %v6684_v19, %v2559_v0  ;;  %v2567_v0 = vadd.f32 %v6696_v26, %v6695_v61 }
 0x20f   : > { %v3655_v50 = vpack.c.bf16 %v3628_v54, %v3627_v28  ;;  %v3535_v3 = vadd.f32 %v3444_v42, %v3207_v45  ;;  %v3633_v8 = vmax.f32 %v3537_v55, 0.0  ;;  %v3167_v54 = vpop.f32.mrf.mxu1  ;;  %v6685_v45 = vld [vmem:[#allocation23_spill] sm:$0xff] }
 0x210   : > { %v4972_v4 = vpop.f32.mrf.mxu0  ;;  %v3216_v46 = vadd.f32 %v3151_v24, %v2881_v41 }
 0x211   : > { %v3538_v57 = vadd.f32 %v4972_v4, %v3210_v60  ;;  %5013 = vmatprep.mubr.bf16.mxu1 %v3655_v50  ;;  %v3631_v39 = vmax.f32 %v3535_v3, 0.0  ;;  %v3215_v60 = vadd.f32 %v6462_v15, %v6685_v45  ;;  %v3218_v50 = vadd.f32 %v6472_v35, %v2883_v2  ;;  %v6687_v3 = vld [vmem:[#allocation11_spill] sm:$0xff] }
 0x212   : > { %v3447_v34 = vpop.f32.mrf.mxu0  ;;  %5014 = vmatmul.mubr.bf16.gmra.mxu1 %v3656_v20  ;;  %v6697_v2 = vld [vmem:[#allocation31_spill] sm:$0xff] }
 0x213   : > { %v3634_v25 = vmax.f32 %v3538_v57, 0.0  ;;  %v3536_v58 = vadd.f32 %v3447_v34, %v3208_v31  ;;  %v6686_v31 = vld [vmem:[#allocation10_spill] sm:$0xff] }
 0x214   : > { %v4975_v7 = vpop.f32.mrf.mxu0  ;;  %v2565_v57 = vadd.f32 %v6687_v3, %v6686_v31 }
 0x215   : > { %v3658_v40 = vpack.c.bf16 %v3634_v25, %v3633_v8  ;;  %v3632_v27 = vmax.f32 %v3536_v58, 0.0  ;;  %v3541_v36 = vadd.f32 %v4975_v7, %v3213_v1  ;;  %v2563_v8 = vadd.f32 %v6689_v21, %v6688_v18  ;;  %v4939_v25 = vpop.f32.mrf.mxu1  ;;  %v6690_v7 = vld [vmem:[#allocation26_spill] sm:$0xff] }
 0x216   : > { %v3460_v52 = vpop.f32.mrf.mxu0  ;;  %v2887_v15 = vadd.f32 %v6403_v44, %v2565_v57  ;;  %v3221_v33 = vadd.f32 %v4935_v62, %v6690_v7  ;;  %v6693_v44 = vld [vmem:[#allocation14_spill] sm:$0xff] }
 0x217   : > { %v3657_v30 = vpack.c.bf16 %v3632_v27, %v3631_v39  ;;  %v3539_v59 = vadd.f32 %v3460_v52, %v3211_v10  ;;  %v3637_v49 = vmax.f32 %v3541_v36, 0.0  ;;  %v6691_v39 = vld [vmem:[#allocation28_spill] sm:$0xff]  ;;  %v3180_v14 = vpop.f32.mrf.mxu1  ;;  %v4282_v7 = vld [vmem:[%s5327_s30 + $0x39] sm:$0xff] }
 0x218   : > { %v4976_v53 = vpop.f32.mrf.mxu0  ;;  %v3222_v36 = vadd.f32 %v4936_v47, %v2887_v15 }
 0x219   : > { %v3542_v17 = vadd.f32 %v4976_v53, %v3214_v12  ;;  %5017 = vmatprep.mubr.bf16.mxu1 %v3657_v30  ;;  %v3635_v37 = vmax.f32 %v3539_v59, 0.0  ;;  %v6692_v12 = vld [vmem:[#allocation27_spill] sm:$0xff] }
 0x21a   : > { %v3463_v51 = vpop.f32.mrf.mxu0  ;;  %5018 = vmatmul.mubr.bf16.gmra.mxu1 %v3658_v40  ;;  %v2885_v40 = vadd.f32 %v6691_v39, %v2563_v8  ;;  %v3219_v30 = vadd.f32 %v3164_v16, %v6692_v12  ;;  %v4280_v39 = vld [vmem:[%s5327_s30 + $0x21] sm:$0xff] }
 0x21b   : > { %v3638_v32 = vmax.f32 %v3542_v17, 0.0  ;;  %v3540_v29 = vadd.f32 %v3463_v51, %v3212_v22  ;;  %v2569_v22 = vadd.f32 %v6694_v43, %v6693_v44  ;;  %v4940_v51 = vpop.f32.mrf.mxu1 }
 0x21c   : > { %v4979_v5 = vpop.f32.mrf.mxu0  ;;  %v3220_v59 = vadd.f32 %v3167_v54, %v2885_v40 }
 0x21d   : > { %v3660_v28 = vpack.c.bf16 %v3638_v32, %v3637_v49  ;;  %v3636_v20 = vmax.f32 %v3540_v29, 0.0  ;;  %v3545_v4 = vadd.f32 %v4979_v5, %v3217_v38  ;;  %v2891_v49 = vadd.f32 %v6697_v2, %v2569_v22  ;;  %v6698_v29 = vld [vmem:[#allocation29_spill] sm:$0xff]  ;;  %v6699_v5 = vld [vmem:[#allocation32_spill] sm:$0xff]  ;;  %v4288_v2 = vld [vmem:[%s5327_s30 + $0x81] sm:$0xff] }
 0x21e   : > { %v3476_v42 = vpop.f32.mrf.mxu0  ;;  %v3225_v56 = vadd.f32 %v4939_v25, %v6698_v29  ;;  %v2889_v19 = vadd.f32 %v6699_v5, %v2567_v0  ;;  %v4289_v22 = vld [vmem:[%s5327_s30 + $0x91] sm:$0xff]  ;;  %v4290_v0 = vld [vmem:[%s5327_s30 + $0x99] sm:$0xff] }
 0x21f   : > { %v3659_v55 = vpack.c.bf16 %v3636_v20, %v3635_v37  ;;  %v3543_v23 = vadd.f32 %v3476_v42, %v3215_v60  ;;  %v3641_v48 = vmax.f32 %v3545_v4, 0.0  ;;  %v3183_v20 = vpop.f32.mrf.mxu1  ;;  %v6700_v42 = vld [vmem:[#allocation30_spill] sm:$0xff]  ;;  %v3226_v60 = vadd.f32 %v4940_v51, %v2891_v49 }
 0x220   : > { %v4980_v11 = vpop.f32.mrf.mxu0  ;;  %v3223_v45 = vadd.f32 %v3180_v14, %v6700_v42  ;;  %v4297_v42 = vld [vmem:[%s5327_s30 + $0xf1] sm:$0xff] }
 0x221   : > { %v3546_v34 = vadd.f32 %v4980_v11, %v3218_v50  ;;  %5021 = vmatprep.mubr.bf16.mxu1 %v3659_v55  ;;  %v3639_v24 = vmax.f32 %v3543_v23, 0.0  ;;  %v3224_v11 = vadd.f32 %v3183_v20, %v2889_v19  ;;  %v4294_v19 = vld [vmem:[%s5327_s30 + $0xc9] sm:$0xff] }
 0x222   : > { %v3479_v58 = vpop.f32.mrf.mxu0  ;;  %5022 = vmatmul.mubr.bf16.gmra.mxu1 %v3660_v28 }
 0x223   : > { %v3642_v35 = vmax.f32 %v3546_v34, 0.0  ;;  %v3544_v1 = vadd.f32 %v3479_v58, %v3216_v46  ;;  %v4281_v58 = vld [vmem:[%s5327_s30 + $0x31] sm:$0xff] }
 0x224   : > { %v4983_v13 = vpop.f32.mrf.mxu0 }
 0x225   : > { %v3662_v27 = vpack.c.bf16 %v3642_v35, %v3641_v48  ;;  %v3640_v52 = vmax.f32 %v3544_v1, 0.0  ;;  %v3549_v6 = vadd.f32 %v4983_v13, %v3221_v33  ;;  %v4279_v48 = vld [vmem:[%s5327_s30 + $0x19] sm:$0xff] }
 0x226   : > { %v3492_v10 = vpop.f32.mrf.mxu0 }
 0x227   : > { %v3661_v53 = vpack.c.bf16 %v3640_v52, %v3639_v24  ;;  %v3547_v17 = vadd.f32 %v3492_v10, %v3219_v30  ;;  %v3645_v16 = vmax.f32 %v3549_v6, 0.0  ;;  %v4283_v10 = vld [vmem:[%s5327_s30 + $0x49] sm:$0xff] }
 0x228   : > { %v4984_v63 = vpop.f32.mrf.mxu0 }
 0x229   : > { %v3550_v62 = vadd.f32 %v4984_v63, %v3222_v36  ;;  %5025 = vmatprep.mubr.bf16.mxu1 %v3661_v53  ;;  %v3643_v41 = vmax.f32 %v3547_v17, 0.0  ;;  %v4286_v36 = vld [vmem:[%s5327_s30 + $0x69] sm:$0xff]  ;;  %v4284_v63 = vld [vmem:[%s5327_s30 + $0x51] sm:$0xff] }
 0x22a   : > { %v3495_v9 = vpop.f32.mrf.mxu0  ;;  %5026 = vmatmul.mubr.bf16.gmra.mxu1 %v3662_v27  ;;  %v4285_v27 = vld [vmem:[%s5327_s30 + $0x61] sm:$0xff] }
 0x22b   : > { %v3646_v47 = vmax.f32 %v3550_v62, 0.0  ;;  %v3548_v32 = vadd.f32 %v3495_v9, %v3220_v59  ;;  %v4287_v62 = vld [vmem:[%s5327_s30 + $0x79] sm:$0xff] }
 0x22c   : > { %v4987_v38 = vpop.f32.mrf.mxu0 }
 0x22d   : > { %v3664_v37 = vpack.c.bf16 %v3646_v47, %v3645_v16  ;;  %v3644_v28 = vmax.f32 %v3548_v32, 0.0  ;;  %v3553_v55 = vadd.f32 %v4987_v38, %v3225_v56  ;;  %v4293_v47 = vld [vmem:[%s5327_s30 + $0xc1] sm:$0xff]  ;;  %v4291_v56 = vld [vmem:[%s5327_s30 + $0xa9] sm:$0xff] }
 0x22e   : > { %v3508_v54 = vpop.f32.mrf.mxu0 }
 0x22f   : > { %v3663_v50 = vpack.c.bf16 %v3644_v28, %v3643_v41  ;;  %v3551_v31 = vadd.f32 %v3508_v54, %v3223_v45  ;;  %v3649_v46 = vmax.f32 %v3553_v55, 0.0  ;;  %v4292_v28 = vld [vmem:[%s5327_s30 + $0xb1] sm:$0xff] }
 0x230   : > { %v4988_v4 = vpop.f32.mrf.mxu0 }
 0x231   : > { %v3554_v3 = vadd.f32 %v4988_v4, %v3226_v60  ;;  %5029 = vmatprep.mubr.bf16.mxu1 %v3663_v50  ;;  %v3647_v18 = vmax.f32 %v3551_v31, 0.0  ;;  %v4295_v50 = vld [vmem:[%s5327_s30 + $0xd9] sm:$0xff] }
 0x232   : > { %v3511_v57 = vpop.f32.mrf.mxu0  ;;  %5030 = vmatmul.mubr.bf16.gmra.mxu1 %v3664_v37 }
 0x233   : > { %v3650_v23 = vmax.f32 %v3554_v3, 0.0  ;;  %v3552_v34 = vadd.f32 %v3511_v57, %v3224_v11  ;;  %v4298_v11 = vld [vmem:[%s5327_s30 + $0xf9] sm:$0xff]  ;;  %v4296_v57 = vld [vmem:[%s5327_s30 + $0xe1] sm:$0xff] }
 0x235   : > { %v3666_v21 = vpack.c.bf16 %v3650_v23, %v3649_v46  ;;  %v3648_v8 = vmax.f32 %v3552_v34, 0.0  ;;  %v4301_v34 = vld [vmem:[%s5327_s30 + $0x121] sm:$0xff] }
 0x237   : > { %v3665_v25 = vpack.c.bf16 %v3648_v8, %v3647_v18  ;;  %v4299_v8 = vld [vmem:[%s5327_s30 + $0x109] sm:$0xff] }
 0x239   : > { %5033 = vmatprep.mubr.bf16.mxu1 %v3665_v25 }
 0x23a   : > { %5034 = vmatmul.mubr.bf16.gmra.mxu1 %v3666_v21 }
 0x2c2   : > { %v5007_v15 = vpop.f32.mrf.mxu1 }
 0x2c3   : > { %v3927_v35 = vadd.f32 %v5007_v15, %v4281_v58  ;;  %v4302_v15 = vld [vmem:[%s5327_s30 + $0x129] sm:$0xff] }
 0x2c4   : > { %v3765_v1 = vpop.f32.mrf.mxu1 }
 0x2c5   : > { %3959 = vst [vmem:[%s6527_s10 + $0x10] sm:$0xff] %v3927_v35  ;;  %v3925_v33 = vadd.f32 %v4279_v48, %v3765_v1  ;;  %v4300_v1 = vld [vmem:[%s5327_s30 + $0x111] sm:$0xff] }
 0x2c6   : > { %v5008_v13 = vpop.f32.mrf.mxu1 }
 0x2c7   : > { %3957 = vst [vmem:[%s6527_s10] sm:$0xff] %v3925_v33  ;;  %v3928_v40 = vadd.f32 %v5008_v13, %v4282_v7  ;;  %v4305_v13 = vld [vmem:[%s5327_s30 + $0x151] sm:$0xff] }
 0x2c8   : > { %v3768_v24 = vpop.f32.mrf.mxu1 }
 0x2c9   : > { %3960 = vst [vmem:[%s6527_s10 + $0x18] sm:$0xff] %v3928_v40  ;;  %v3926_v52 = vadd.f32 %v4280_v39, %v3768_v24  ;;  %v4303_v24 = vld [vmem:[%s5327_s30 + $0x139] sm:$0xff] }
 0x2ca   : > { %v5011_v14 = vpop.f32.mrf.mxu1 }
 0x2cb   : > { %3958 = vst [vmem:[%s6527_s10 + $0x8] sm:$0xff] %v3926_v52  ;;  %v3931_v12 = vadd.f32 %v5011_v14, %v4285_v27  ;;  %v4306_v14 = vld [vmem:[%s5327_s30 + $0x159] sm:$0xff] }
 0x2cc   : > { %v3781_v30 = vpop.f32.mrf.mxu1 }
 0x2cd   : > { %3963 = vst [vmem:[%s6527_s10 + $0x30] sm:$0xff] %v3931_v12  ;;  %v3929_v53 = vadd.f32 %v4283_v10, %v3781_v30  ;;  %v4304_v30 = vld [vmem:[%s5327_s30 + $0x141] sm:$0xff] }
 0x2ce   : > { %v5012_v6 = vpop.f32.mrf.mxu1 }
 0x2cf   : > { %3961 = vst [vmem:[%s6527_s10 + $0x20] sm:$0xff] %v3929_v53  ;;  %v3932_v44 = vadd.f32 %v5012_v6, %v4286_v36  ;;  %v4309_v6 = vld [vmem:[%s5327_s30 + $0x181] sm:$0xff] }
 0x2d0   : > { %v3784_v43 = vpop.f32.mrf.mxu1 }
 0x2d1   : > { %3964 = vst [vmem:[%s6527_s10 + $0x38] sm:$0xff] %v3932_v44  ;;  %v3930_v59 = vadd.f32 %v4284_v63, %v3784_v43  ;;  %v4307_v43 = vld [vmem:[%s5327_s30 + $0x169] sm:$0xff] }
 0x2d2   : > { %v5015_v17 = vpop.f32.mrf.mxu1 }
 0x2d3   : > { %3962 = vst [vmem:[%s6527_s10 + $0x28] sm:$0xff] %v3930_v59  ;;  %v3935_v61 = vadd.f32 %v5015_v17, %v4289_v22  ;;  %v4310_v17 = vld [vmem:[%s5327_s30 + $0x189] sm:$0xff] }
 0x2d4   : > { %v3797_v26 = vpop.f32.mrf.mxu1 }
 0x2d5   : > { %3967 = vst [vmem:[%s6527_s10 + $0x50] sm:$0xff] %v3935_v61  ;;  %v3933_v51 = vadd.f32 %v4287_v62, %v3797_v26  ;;  %v4308_v26 = vld [vmem:[%s5327_s30 + $0x171] sm:$0xff]  ;;  %s5159_s30 = scalar_lea.vmem %s6595_s17, 4096 }
 0x2d6   : > { %v5016_v9 = vpop.f32.mrf.mxu1  ;;  %p5160_p11 = scmp.ne.s32.totalorder %s6595_s17, %s5159_s30  ;;  %p5167_p1 = scmp.lt.s32.totalorder %s5165_s27, %s5159_s30 }
 0x2d7   : > { %3965 = vst [vmem:[%s6527_s10 + $0x40] sm:$0xff] %v3933_v51  ;;  %v3936_v49 = vadd.f32 %v5016_v9, %v4290_v0 }
 0x2d8   : > { %v3800_v16 = vpop.f32.mrf.mxu1  ;;  %p5161_p12 = pnand %p5160_p11, %p5282_p5  ;;  %p5168_p2 = por %p5167_p1, %p5166_p0 }
 0x2d9   : > { %3968 = vst [vmem:[%s6527_s10 + $0x58] sm:$0xff] %v3936_v49  ;;  %v3934_v32 = vadd.f32 %v4288_v2, %v3800_v16 }
 0x2da   : > { %v5019_v29 = vpop.f32.mrf.mxu1  ;;  %p5162_p13 = pneg %p5161_p12 }
 0x2db   : > { %3966 = vst [vmem:[%s6527_s10 + $0x48] sm:$0xff] %v3934_v32  ;;  %v3939_v38 = vadd.f32 %v5019_v29, %v4293_v47 }
 0x2dc   : > { %v3813_v5 = vpop.f32.mrf.mxu1  ;;  %p5169_p3 = pnand %p5168_p2, %p5162_p13 }
 0x2dd   : > { %3971 = vst [vmem:[%s6527_s10 + $0x70] sm:$0xff] %v3939_v38  ;;  %v3937_v41 = vadd.f32 %v4291_v56, %v3813_v5 }
 0x2de   : > { %v5020_v37 = vpop.f32.mrf.mxu1 }
 0x2df   : > { %3969 = vst [vmem:[%s6527_s10 + $0x60] sm:$0xff] %v3937_v41  ;;  %v3940_v20 = vadd.f32 %v5020_v37, %v4294_v19 }
 0x2e0   : > { %v3816_v54 = vpop.f32.mrf.mxu1 }
 0x2e1   : > { %3972 = vst [vmem:[%s6527_s10 + $0x78] sm:$0xff] %v3940_v20  ;;  %v3938_v45 = vadd.f32 %v4292_v28, %v3816_v54 }
 0x2e2   : > { %v5023_v60 = vpop.f32.mrf.mxu1 }
 0x2e3   : > { %3970 = vst [vmem:[%s6527_s10 + $0x68] sm:$0xff] %v3938_v45  ;;  %v3943_v55 = vadd.f32 %v5023_v60, %v4297_v42 }
 0x2e4   : > { %v3829_v4 = vpop.f32.mrf.mxu1 }
 0x2e5   : > { %3975 = vst [vmem:[%s6527_s10 + $0x90] sm:$0xff] %v3943_v55  ;;  %v3941_v31 = vadd.f32 %v4295_v50, %v3829_v4 }
 0x2e6   : > { %v5024_v3 = vpop.f32.mrf.mxu1 }
 0x2e7   : > { %3973 = vst [vmem:[%s6527_s10 + $0x80] sm:$0xff] %v3941_v31  ;;  %v3944_v46 = vadd.f32 %v5024_v3, %v4298_v11 }
 0x2e8   : > { %v3832_v23 = vpop.f32.mrf.mxu1 }
 0x2e9   : > { %3976 = vst [vmem:[%s6527_s10 + $0x98] sm:$0xff] %v3944_v46  ;;  %v3942_v18 = vadd.f32 %v4296_v57, %v3832_v23 }
 0x2ea   : > { %v5027_v21 = vpop.f32.mrf.mxu1 }
 0x2eb   : > { %3974 = vst [vmem:[%s6527_s10 + $0x88] sm:$0xff] %v3942_v18  ;;  %v3947_v25 = vadd.f32 %v5027_v21, %v4301_v34 }
 0x2ec   : > { %v3845_v58 = vpop.f32.mrf.mxu1 }
 0x2ed   : > { %3979 = vst [vmem:[%s6527_s10 + $0xb0] sm:$0xff] %v3947_v25  ;;  %v3945_v48 = vadd.f32 %v4299_v8, %v3845_v58 }
 0x2ee   : > { %v5028_v35 = vpop.f32.mrf.mxu1 }
 0x2ef   : > { %3977 = vst [vmem:[%s6527_s10 + $0xa0] sm:$0xff] %v3945_v48  ;;  %v3948_v7 = vadd.f32 %v5028_v35, %v4302_v15 }
 0x2f0   : > { %v3848_v33 = vpop.f32.mrf.mxu1 }
 0x2f1   : > { %3980 = vst [vmem:[%s6527_s10 + $0xb8] sm:$0xff] %v3948_v7  ;;  %v3946_v39 = vadd.f32 %v4300_v1, %v3848_v33 }
 0x2f2   : > { %v5031_v40 = vpop.f32.mrf.mxu1 }
 0x2f3   : > { %3978 = vst [vmem:[%s6527_s10 + $0xa8] sm:$0xff] %v3946_v39  ;;  %v3951_v27 = vadd.f32 %v5031_v40, %v4305_v13 }
 0x2f4   : > { %v3861_v52 = vpop.f32.mrf.mxu1 }
 0x2f5   : > { %3983 = vst [vmem:[%s6527_s10 + $0xd0] sm:$0xff] %v3951_v27  ;;  %v3949_v10 = vadd.f32 %v4303_v24, %v3861_v52 }
 0x2f6   : > { %v5032_v12 = vpop.f32.mrf.mxu1 }
 0x2f7   : > { %3981 = vst [vmem:[%s6527_s10 + $0xc0] sm:$0xff] %v3949_v10  ;;  %v3952_v36 = vadd.f32 %v5032_v12, %v4306_v14 }
 0x2f8   : > { %v3864_v53 = vpop.f32.mrf.mxu1 }
 0x2f9   : > { %3984 = vst [vmem:[%s6527_s10 + $0xd8] sm:$0xff] %v3952_v36  ;;  %v3950_v63 = vadd.f32 %v4304_v30, %v3864_v53 }
 0x2fa   : > { %v5035_v44 = vpop.f32.mrf.mxu1 }
 0x2fb   : > { %3982 = vst [vmem:[%s6527_s10 + $0xc8] sm:$0xff] %v3950_v63  ;;  %v3955_v22 = vadd.f32 %v5035_v44, %v4309_v6 }
 0x2fc   : > { %v3877_v59 = vpop.f32.mrf.mxu1 }
 0x2fd   : > { %3987 = vst [vmem:[%s6527_s10 + $0xf0] sm:$0xff] %v3955_v22  ;;  %v3953_v62 = vadd.f32 %v4307_v43, %v3877_v59 }
 0x2fe   : > { %v5036_v61 = vpop.f32.mrf.mxu1 }
 0x2ff   : > { %3985 = vst [vmem:[%s6527_s10 + $0xe0] sm:$0xff] %v3953_v62  ;;  %v3956_v0 = vadd.f32 %v5036_v61, %v4310_v17 }
 0x300   : > { %v3880_v51 = vpop.f32.mrf.mxu1 }
 0x301   : > { %3988 = vst [vmem:[%s6527_s10 + $0xf8] sm:$0xff] %v3956_v0  ;;  %v3954_v9 = vadd.f32 %v4308_v26, %v3880_v51 }
 0x303   : > { %3986 = vst [vmem:[%s6527_s10 + $0xe8] sm:$0xff] %v3954_v9 }
 0x304   : > { %5172 = shalt.err (!%p5169_p3)
}
 0x305   : > { %s5173_s28 = scalar_lea.hbm %s6593_s24, 4096  ;;  %s5177_s5 = scalar_lea.hbm %s6644_s3, 8192 }
 0x306   : > { %p5174_p4 = scmp.ne.s32.totalorder %s6593_s24, %s5173_s28  ;;  %p5178_p9 = scmp.lt.s32.totalorder %s6593_s24, %s6644_s3 }
 0x307   : > { %p5179_p10 = scmp.lt.s32.totalorder %s5177_s5, %s5173_s28 }
 0x308   : > { %p5175_p7 = pnand %p5174_p4, %p5282_p5 }
 0x309   : > { %p5180_p11 = por %p5179_p10, %p5178_p9 }
 0x30a   : > { %p5176_p8 = pneg %p5175_p7 }
 0x30c   : > { %p5181_p12 = pnand %p5180_p11, %p5176_p8 }
 0x30e   : > { %5184 = shalt.err (!%p5181_p12)
}
 0x30f   : > { %s5222_s8 = smov 128   ;;  %s5223_s9 = smov 8  }
 0x310   : > { %5038 = dma.vmem_to_hbm [thread:$0]  (%p5282_p5), %s6595_s17, 4096, %s6593_s24, %s6601_s16, %s5222_s8, %s5222_s8, %s5223_s9  }
 0x311 PF: > { %p5044_p13 = scmp.ge.s32.totalorder %s5219_s15, 2  ;;  %s4018_s10 = sand.u32 1, %s5207_s12  }
 0x312   : > { %s4019_s11 = scalar_lea.sflag [#allocation4], %s4018_s10 }
 0x313   : > { %p5041_p0 = pnand %p5044_p13, %p5286_p6 }
 0x315   : > { %p5042_p1 = pneg %p5041_p0 }
 0x317   : > { %5202 = dma.done.wait (%p5042_p1), %s4019_s11, 4096  }
 0x318   : > { %5204 = vsyncadd (%p5042_p1), %s4019_s11, 4294963200  ;;  %p13_p2 = scmp.ge.s32.totalorder %s5269_s18, 4   ;;  %s6701_s12 = smov %s5211_s13 }
 0x319   : > { %s6702_s13 = smov %s5215_s14  ;;  %s6703_s14 = smov %s5280_s21 }
 0x31a   : > { %s6704_s15 = smov %s5269_s18  ;;  %15 = sbr.rel (!%p13_p2) target bundleno = 3 (0x3), region = 76 }
 0x31f   :  { %4024 = vsyncpa [#allocation4], 1 }
 0x320   :  { %4026 = vsyncpa [#allocation4 + $0x1], 1 }

</bundles_post_ra>
